<compile_context>
chip_gen: v5e
topology: v5e:2x2
jax: 0.10.0
libtpu: 0.0.40
codegen_flags: <defaults>
</compile_context>

<pallas_src>
import functools

import jax
import jax.numpy as jnp
from jax.experimental import pallas as pl
from jax.experimental.pallas import tpu as pltpu


def pointer_kernel(parag_ref, sent_ref, plen_ref,
                   w_p2h_ref, b_p2h_ref,
                   w_xh_ref, b_lstm_ref,
                   w_attn_t_ref,
                   out_ref):
    B, P, E = sent_ref.shape
    H = w_p2h_ref.shape[1]

    # ---- loop-invariant setup (hoisted out of the serial recurrence) -------
    sent = sent_ref[...]                                                 # (B, P, E)
    w_xh = w_xh_ref[...]                                                 # (E+H, 4H) fused LSTM weight
    b_lstm = b_lstm_ref[...]                                             # (1, 4H)   pre-summed bias

    # Hoisted attention projection: sent_proj[b,p,h] = sum_e W_attn[h,e] * sent[b,p,e]
    sent_proj = jnp.dot(sent.reshape(B * P, E), w_attn_t_ref[...],
                        preferred_element_type=jnp.float32).reshape(B, P, H)

    pos = jax.lax.broadcasted_iota(jnp.int32, (B, P), 1)                 # (B, P)

    # init hidden / cell / selected / paragraph mask
    h0 = (jnp.dot(parag_ref[...], w_p2h_ref[...],
                  preferred_element_type=jnp.float32) + b_p2h_ref[...])  # parag_to_hidden
    c0 = jnp.zeros((B, H), jnp.float32)
    sel0 = jnp.zeros((B, E), jnp.float32)                                # selected = zeros
    mask0 = (pos >= plen_ref[...]).astype(jnp.float32)                   # get_parmask (1.0 == masked)

    def step(i, carry):
        h, c, x, mask = carry

        # ---- fused single-layer LSTM cell (PyTorch gate order: i, f, g, o) -
        xh = jnp.concatenate([x, h], axis=-1)                            # (B, E+H)
        gates = jnp.dot(xh, w_xh, preferred_element_type=jnp.float32) + b_lstm
        i_g = jax.nn.sigmoid(gates[:, 0:H])
        f_g = jax.nn.sigmoid(gates[:, H:2 * H])
        g_g = jnp.tanh(gates[:, 2 * H:3 * H])
        o_g = jax.nn.sigmoid(gates[:, 3 * H:4 * H])
        c_new = f_g * c + i_g * g_g
        h_new = o_g * jnp.tanh(c_new)

        # ---- pointer attention over sentences -------------------------------
        # scores[b,p] = h_new[b,:] . sent_proj[b,p,:]   (batched (1,H)x(H,P))
        scores = jnp.einsum('bqh,bph->bqp', h_new[:, None, :], sent_proj,
                            preferred_element_type=jnp.float32)[:, 0, :]  # (B, P)
        scores = jnp.where(mask > 0.5, jnp.float32(-1e9), scores)

        m = jnp.max(scores, axis=-1, keepdims=True)
        ex = jnp.exp(scores - m)
        attn = ex * pl.reciprocal(jnp.sum(ex, axis=-1, keepdims=True), approx=True)
        out_ref[i] = attn                                                 # res[i]

        # ---- argmax (first occurrence), gather selected sentence, update mask
        is_max = scores >= m
        idx = jnp.min(jnp.where(is_max, pos, jnp.int32(P)),
                      axis=-1, keepdims=True)                             # (B, 1)
        onehot = (pos == idx).astype(jnp.float32)                         # (B, P)
        sel_new = jnp.einsum('bqp,bpe->bqe', onehot[:, None, :], sent,
                             preferred_element_type=jnp.float32)[:, 0, :]  # (B, E)
        mask_new = jnp.maximum(mask, onehot)                               # do_mask
        return (h_new, c_new, sel_new, mask_new)

    # short static trip count -> fully unroll so the LLO scheduler sees across steps
    jax.lax.fori_loop(0, P, step, (h0, c0, sel0, mask0), unroll=True)


@functools.partial(jax.jit, static_argnames=())
def informed_pointer_forward(parag_embedded, sent_embedded, word_embedded,
                             sent_mask, p_lengths, params):
    del word_embedded, sent_mask  # unused in the 'notinformed' branch (shapes only)
    B, P, E = sent_embedded.shape

    vmem = pl.BlockSpec(memory_space=pltpu.MemorySpace.VMEM)
    out = pl.pallas_call(
        pointer_kernel,
        out_shape=jax.ShapeDtypeStruct((P, B, P), jnp.float32),
        in_specs=[vmem] * 8,
        out_specs=vmem,
    )(parag_embedded.astype(jnp.float32),
      sent_embedded.astype(jnp.float32),
      p_lengths.reshape(B, 1).astype(jnp.int32),
      params["w_p2h_t"], params["b_p2h"],
      params["w_xh_t"], params["b_lstm"],
      params["w_attn_t"])

    return jnp.transpose(out, (1, 0, 2))                                 # (B, p_len, p_len)


def make_params(key, embedding_dim, rnn_hidden_size):
    E, H = embedding_dim, rnn_hidden_size
    ks = jax.random.split(key, 7)
    s = 0.1
    # parag_to_hidden: nn.Linear(E, H) -> pre-transposed weight (E, H)
    w_p2h_t = s * jax.random.normal(ks[0], (E, H), jnp.float32)
    b_p2h = s * jax.random.normal(ks[1], (1, H), jnp.float32)
    # LSTM layer 0: weight_ih (4H, E), weight_hh (4H, H) -> pre-transposed
    w_ih_t = s * jax.random.normal(ks[2], (E, 4 * H), jnp.float32)
    w_hh_t = s * jax.random.normal(ks[3], (H, 4 * H), jnp.float32)
    b_ih = s * jax.random.normal(ks[4], (1, 4 * H), jnp.float32)
    b_hh = s * jax.random.normal(ks[5], (1, 4 * H), jnp.float32)
    # pointer Attention(rnn_hidden_size, embedding_dim): bilinear weight (H, E)
    w_attn = s * jax.random.normal(ks[6], (H, E), jnp.float32)
    return {
        "w_p2h_t": w_p2h_t,
        "b_p2h": b_p2h,
        # fused LSTM: gates = [x | h] @ w_xh_t + b_lstm   (done here, not in-kernel)
        "w_xh_t": jnp.concatenate([w_ih_t, w_hh_t], axis=0),   # (E+H, 4H)
        "b_lstm": b_ih + b_hh,                                 # (1, 4H)
        # bilinear weight pre-transposed to (E, H) for the sent-side projection
        "w_attn_t": jnp.transpose(w_attn),                     # (E, H)
    }


def pointer_reference(parag, sent, p_lengths, params):
    """Pure-JAX reference with identical (fused) parameterization."""
    B, P, E = sent.shape
    H = params["w_p2h_t"].shape[1]
    h = parag @ params["w_p2h_t"] + params["b_p2h"]
    c = jnp.zeros((B, H), jnp.float32)
    sel = jnp.zeros((B, E), jnp.float32)
    pos = jnp.arange(P, dtype=jnp.int32)[None, :]
    mask = (pos >= p_lengths[:, None]).astype(jnp.float32)
    sent_proj = jnp.einsum('bpe,eh->bph', sent, params["w_attn_t"])
    rows = []
    for _ in range(P):
        gates = jnp.concatenate([sel, h], -1) @ params["w_xh_t"] + params["b_lstm"]
        i_g = jax.nn.sigmoid(gates[:, :H])
        f_g = jax.nn.sigmoid(gates[:, H:2 * H])
        g_g = jnp.tanh(gates[:, 2 * H:3 * H])
        o_g = jax.nn.sigmoid(gates[:, 3 * H:])
        c = f_g * c + i_g * g_g
        h = o_g * jnp.tanh(c)
        scores = jnp.einsum('bh,bph->bp', h, sent_proj)
        scores = jnp.where(mask > 0.5, jnp.float32(-1e9), scores)
        rows.append(jax.nn.softmax(scores, axis=-1))
        idx = jnp.argmax(scores, axis=-1)
        onehot = jax.nn.one_hot(idx, P, dtype=jnp.float32)
        sel = jnp.einsum('bp,bpe->be', onehot, sent)
        mask = jnp.maximum(mask, onehot)
    return jnp.stack(rows, axis=1)                                        # (B, P, P)


if __name__ == "__main__":
    B, P, S, E, H = 2, 8, 8, 32, 32  # batch, p_len, s_len, embedding_dim, rnn_hidden_size

    key = jax.random.PRNGKey(0)
    k_par, k_sent, k_word, k_params = jax.random.split(key, 4)

    parag_embedded = jax.random.normal(k_par, (B, E), jnp.float32)
    sent_embedded = jax.random.normal(k_sent, (B, P, E), jnp.float32)
    word_embedded = jax.random.normal(k_word, (B, P, S, E), jnp.float32)
    sent_mask = jnp.ones((B, P, S), jnp.float32)
    p_lengths = jnp.array([8, 5], jnp.int32)

    params = make_params(k_params, E, H)

    out = informed_pointer_forward(parag_embedded, sent_embedded, word_embedded,
                                   sent_mask, p_lengths, params)
    out = jax.block_until_ready(out)

    assert out.shape == (B, P, P)
    assert bool(jnp.all(jnp.isfinite(out)))
    # each step's attention row sums to ~1 (approx-reciprocal softmax -> loose tol)
    assert bool(jnp.allclose(jnp.sum(out, axis=-1), 1.0, atol=1e-2))
    # match the pure-JAX reference
    ref = pointer_reference(parag_embedded, sent_embedded, p_lengths, params)
    assert bool(jnp.allclose(out, ref, atol=3e-3, rtol=3e-3))
    print("KERNEL_OK")
</pallas_src>

<mosaic_0001>
module attributes {stable_mosaic.version = 11 : i64} {
  func.func @pointer_kernel(%arg0: memref<2x32xf32, #tpu.memory_space<vmem>>, %arg1: memref<2x8x32xf32, #tpu.memory_space<vmem>>, %arg2: memref<2x1xi32, #tpu.memory_space<vmem>>, %arg3: memref<32x32xf32, #tpu.memory_space<vmem>>, %arg4: memref<1x32xf32, #tpu.memory_space<vmem>>, %arg5: memref<64x128xf32, #tpu.memory_space<vmem>>, %arg6: memref<1x128xf32, #tpu.memory_space<vmem>>, %arg7: memref<32x32xf32, #tpu.memory_space<vmem>>, %arg8: memref<8x2x8xf32, #tpu.memory_space<vmem>>) attributes {dimension_semantics = [], scalar_prefetch = 0 : i64, scratch_operands = 0 : i64, tpu.core_type = #tpu.core_type<tc>} {
    %c0 = arith.constant 0 : index
    %c0_0 = arith.constant 0 : index
    %c0_1 = arith.constant 0 : index
    %0 = vector.load %arg1[%c0, %c0_0, %c0_1] : memref<2x8x32xf32, #tpu.memory_space<vmem>>, vector<2x8x32xf32>
    %c0_2 = arith.constant 0 : index
    %c0_3 = arith.constant 0 : index
    %1 = vector.load %arg5[%c0_2, %c0_3] : memref<64x128xf32, #tpu.memory_space<vmem>>, vector<64x128xf32>
    %c0_4 = arith.constant 0 : index
    %c0_5 = arith.constant 0 : index
    %2 = vector.load %arg6[%c0_4, %c0_5] : memref<1x128xf32, #tpu.memory_space<vmem>>, vector<1x128xf32>
    %3 = vector.shape_cast %0 : vector<2x8x32xf32> to vector<16x32xf32>
    %c0_6 = arith.constant 0 : index
    %c0_7 = arith.constant 0 : index
    %4 = vector.load %arg7[%c0_6, %c0_7] : memref<32x32xf32, #tpu.memory_space<vmem>>, vector<32x32xf32>
    %cst = arith.constant dense<0.000000e+00> : vector<16x32xf32>
    %5 = tpu.matmul %3, %4, %cst {dimension_numbers = #tpu.dot_dimension_numbers<[1], [0], [0], [1], [0, 0, 1, 1], [], []>} : vector<16x32xf32>, vector<32x32xf32>, vector<16x32xf32> -> vector<16x32xf32>
    %6 = vector.shape_cast %5 : vector<16x32xf32> to vector<2x8x32xf32>
    %7 = tpu.iota {dimensions = array<i32: 1>} : vector<2x8xi32>
    %c0_8 = arith.constant 0 : index
    %c0_9 = arith.constant 0 : index
    %8 = vector.load %arg0[%c0_8, %c0_9] : memref<2x32xf32, #tpu.memory_space<vmem>>, vector<2x32xf32>
    %c0_10 = arith.constant 0 : index
    %c0_11 = arith.constant 0 : index
    %9 = vector.load %arg3[%c0_10, %c0_11] : memref<32x32xf32, #tpu.memory_space<vmem>>, vector<32x32xf32>
    %cst_12 = arith.constant dense<0.000000e+00> : vector<2x32xf32>
    %10 = tpu.matmul %8, %9, %cst_12 {dimension_numbers = #tpu.dot_dimension_numbers<[1], [0], [0], [1], [0, 0, 1, 1], [], []>} : vector<2x32xf32>, vector<32x32xf32>, vector<2x32xf32> -> vector<2x32xf32>
    %c0_13 = arith.constant 0 : index
    %c0_14 = arith.constant 0 : index
    %11 = vector.load %arg4[%c0_13, %c0_14] : memref<1x32xf32, #tpu.memory_space<vmem>>, vector<1x32xf32>
    %12 = vector.broadcast %11 : vector<1x32xf32> to vector<2x32xf32>
    %13 = arith.addf %10, %12 : vector<2x32xf32>
    %cst_15 = arith.constant 0.000000e+00 : f32
    %14 = vector.broadcast %cst_15 : f32 to vector<2x32xf32>
    %cst_16 = arith.constant 0.000000e+00 : f32
    %15 = vector.broadcast %cst_16 : f32 to vector<2x32xf32>
    %c0_17 = arith.constant 0 : index
    %c0_18 = arith.constant 0 : index
    %16 = vector.load %arg2[%c0_17, %c0_18] : memref<2x1xi32, #tpu.memory_space<vmem>>, vector<2x1xi32>
    %17 = vector.broadcast %16 : vector<2x1xi32> to vector<2x8xi32>
    %18 = arith.cmpi sge, %7, %17 : vector<2x8xi32>
    %19 = arith.extui %18 : vector<2x8xi1> to vector<2x8xi32>
    %20 = arith.sitofp %19 : vector<2x8xi32> to vector<2x8xf32>
    %c0_i32 = arith.constant 0 : i32
    %21 = tpu.concatenate %15, %13 in 1 : vector<2x32xf32>, vector<2x32xf32> -> vector<2x64xf32>
    %cst_19 = arith.constant dense<0.000000e+00> : vector<2x128xf32>
    %22 = tpu.matmul %21, %1, %cst_19 {dimension_numbers = #tpu.dot_dimension_numbers<[1], [0], [0], [1], [0, 0, 1, 1], [], []>} : vector<2x64xf32>, vector<64x128xf32>, vector<2x128xf32> -> vector<2x128xf32>
    %23 = vector.broadcast %2 : vector<1x128xf32> to vector<2x128xf32>
    %24 = arith.addf %22, %23 : vector<2x128xf32>
    %25 = vector.extract_strided_slice %24 {offsets = [0, 0], sizes = [2, 32], strides = [1, 1]} : vector<2x128xf32> to vector<2x32xf32>
    %26 = arith.negf %25 : vector<2x32xf32>
    %27 = math.exp %26 : vector<2x32xf32>
    %cst_20 = arith.constant 1.000000e+00 : f32
    %28 = vector.broadcast %cst_20 : f32 to vector<2x32xf32>
    %29 = arith.addf %28, %27 : vector<2x32xf32>
    %30 = arith.divf %28, %29 : vector<2x32xf32>
    %31 = vector.extract_strided_slice %24 {offsets = [0, 32], sizes = [2, 32], strides = [1, 1]} : vector<2x128xf32> to vector<2x32xf32>
    %32 = arith.negf %31 : vector<2x32xf32>
    %33 = math.exp %32 : vector<2x32xf32>
    %cst_21 = arith.constant 1.000000e+00 : f32
    %34 = vector.broadcast %cst_21 : f32 to vector<2x32xf32>
    %35 = arith.addf %34, %33 : vector<2x32xf32>
    %36 = arith.divf %34, %35 : vector<2x32xf32>
    %37 = vector.extract_strided_slice %24 {offsets = [0, 64], sizes = [2, 32], strides = [1, 1]} : vector<2x128xf32> to vector<2x32xf32>
    %38 = math.tanh %37 : vector<2x32xf32>
    %39 = vector.extract_strided_slice %24 {offsets = [0, 96], sizes = [2, 32], strides = [1, 1]} : vector<2x128xf32> to vector<2x32xf32>
    %40 = arith.negf %39 : vector<2x32xf32>
    %41 = math.exp %40 : vector<2x32xf32>
    %cst_22 = arith.constant 1.000000e+00 : f32
    %42 = vector.broadcast %cst_22 : f32 to vector<2x32xf32>
    %43 = arith.addf %42, %41 : vector<2x32xf32>
    %44 = arith.divf %42, %43 : vector<2x32xf32>
    %45 = arith.mulf %36, %14 : vector<2x32xf32>
    %46 = arith.mulf %30, %38 : vector<2x32xf32>
    %47 = arith.addf %45, %46 : vector<2x32xf32>
    %48 = math.tanh %47 : vector<2x32xf32>
    %49 = arith.mulf %44, %48 : vector<2x32xf32>
    %50 = vector.shape_cast %49 : vector<2x32xf32> to vector<2x1x32xf32>
    "tpu.trace_start"() <{level = 10 : i32, message = "bqh,bph->bqp"}> : () -> ()
    %cst_23 = arith.constant dense<0.000000e+00> : vector<2x1x8xf32>
    %51 = tpu.matmul %50, %6, %cst_23 {dimension_numbers = #tpu.dot_dimension_numbers<[2], [2], [1], [1], [0, 0, 0, 1, 1, 1], [0], [0]>} : vector<2x1x32xf32>, vector<2x8x32xf32>, vector<2x1x8xf32> -> vector<2x1x8xf32>
    "tpu.trace_stop"() : () -> ()
    %52 = vector.shape_cast %51 : vector<2x1x8xf32> to vector<2x8xf32>
    %cst_24 = arith.constant 5.000000e-01 : f32
    %53 = vector.broadcast %cst_24 : f32 to vector<2x8xf32>
    %54 = arith.cmpf ogt, %20, %53 : vector<2x8xf32>
    %cst_25 = arith.constant -1.000000e+09 : f32
    %55 = vector.broadcast %cst_25 : f32 to vector<2x8xf32>
    %56 = arith.select %54, %55, %52 : vector<2x8xi1>, vector<2x8xf32>
    %cst_26 = arith.constant dense<0xFF800000> : vector<2xf32>
    %57 = vector.multi_reduction <maximumf>, %56, %cst_26 [1] : vector<2x8xf32> to vector<2xf32>
    %58 = vector.shape_cast %57 : vector<2xf32> to vector<2x1xf32>
    %59 = vector.broadcast %58 : vector<2x1xf32> to vector<2x8xf32>
    %60 = arith.subf %56, %59 : vector<2x8xf32>
    %61 = math.exp %60 : vector<2x8xf32>
    %cst_27 = arith.constant dense<0.000000e+00> : vector<2xf32>
    %62 = vector.multi_reduction <add>, %61, %cst_27 [1] : vector<2x8xf32> to vector<2xf32>
    %63 = vector.shape_cast %62 : vector<2xf32> to vector<2x1xf32>
    %64 = tpu.reciprocal %63 {approx = true} : vector<2x1xf32> -> vector<2x1xf32>
    %65 = vector.broadcast %64 : vector<2x1xf32> to vector<2x8xf32>
    %66 = arith.mulf %61, %65 : vector<2x8xf32>
    %67 = arith.index_cast %c0_i32 : i32 to index
    %c0_28 = arith.constant 0 : index
    %c0_29 = arith.constant 0 : index
    %68 = vector.load %arg8[%67, %c0_28, %c0_29] : memref<8x2x8xf32, #tpu.memory_space<vmem>>, vector<1x2x8xf32>
    %69 = vector.shape_cast %68 : vector<1x2x8xf32> to vector<2x8xf32>
    %70 = vector.shape_cast %66 : vector<2x8xf32> to vector<1x2x8xf32>
    tpu.vector_store %arg8[%67, %c0_28, %c0_29], %70 {strides = array<i32>} : memref<8x2x8xf32, #tpu.memory_space<vmem>>, vector<1x2x8xf32>,
    %71 = vector.broadcast %58 : vector<2x1xf32> to vector<2x8xf32>
    %72 = arith.cmpf oge, %56, %71 : vector<2x8xf32>
    %c8_i32 = arith.constant 8 : i32
    %73 = vector.broadcast %c8_i32 : i32 to vector<2x8xi32>
    %74 = arith.select %72, %7, %73 : vector<2x8xi1>, vector<2x8xi32>
    %cst_30 = arith.constant dense<2147483647> : vector<2xi32>
    %75 = vector.multi_reduction <minsi>, %74, %cst_30 [1] : vector<2x8xi32> to vector<2xi32>
    %76 = vector.shape_cast %75 : vector<2xi32> to vector<2x1xi32>
    %77 = vector.broadcast %76 : vector<2x1xi32> to vector<2x8xi32>
    %78 = arith.cmpi eq, %7, %77 : vector<2x8xi32>
    %79 = arith.extui %78 : vector<2x8xi1> to vector<2x8xi32>
    %80 = arith.sitofp %79 : vector<2x8xi32> to vector<2x8xf32>
    %81 = vector.shape_cast %80 : vector<2x8xf32> to vector<2x1x8xf32>
    "tpu.trace_start"() <{level = 10 : i32, message = "bqp,bpe->bqe"}> : () -> ()
    %cst_31 = arith.constant dense<0.000000e+00> : vector<2x1x32xf32>
    %82 = tpu.matmul %81, %0, %cst_31 {dimension_numbers = #tpu.dot_dimension_numbers<[2], [1], [1], [2], [0, 0, 0, 1, 1, 2], [0], [0]>} : vector<2x1x8xf32>, vector<2x8x32xf32>, vector<2x1x32xf32> -> vector<2x1x32xf32>
    "tpu.trace_stop"() : () -> ()
    %83 = vector.shape_cast %82 : vector<2x1x32xf32> to vector<2x32xf32>
    %84 = arith.maximumf %20, %80 : vector<2x8xf32>
    %c1_i32 = arith.constant 1 : i32
    %85 = tpu.concatenate %83, %49 in 1 : vector<2x32xf32>, vector<2x32xf32> -> vector<2x64xf32>
    %cst_32 = arith.constant dense<0.000000e+00> : vector<2x128xf32>
    %86 = tpu.matmul %85, %1, %cst_32 {dimension_numbers = #tpu.dot_dimension_numbers<[1], [0], [0], [1], [0, 0, 1, 1], [], []>} : vector<2x64xf32>, vector<64x128xf32>, vector<2x128xf32> -> vector<2x128xf32>
    %87 = vector.broadcast %2 : vector<1x128xf32> to vector<2x128xf32>
    %88 = arith.addf %86, %87 : vector<2x128xf32>
    %89 = vector.extract_strided_slice %88 {offsets = [0, 0], sizes = [2, 32], strides = [1, 1]} : vector<2x128xf32> to vector<2x32xf32>
    %90 = arith.negf %89 : vector<2x32xf32>
    %91 = math.exp %90 : vector<2x32xf32>
    %cst_33 = arith.constant 1.000000e+00 : f32
    %92 = vector.broadcast %cst_33 : f32 to vector<2x32xf32>
    %93 = arith.addf %92, %91 : vector<2x32xf32>
    %94 = arith.divf %92, %93 : vector<2x32xf32>
    %95 = vector.extract_strided_slice %88 {offsets = [0, 32], sizes = [2, 32], strides = [1, 1]} : vector<2x128xf32> to vector<2x32xf32>
    %96 = arith.negf %95 : vector<2x32xf32>
    %97 = math.exp %96 : vector<2x32xf32>
    %cst_34 = arith.constant 1.000000e+00 : f32
    %98 = vector.broadcast %cst_34 : f32 to vector<2x32xf32>
    %99 = arith.addf %98, %97 : vector<2x32xf32>
    %100 = arith.divf %98, %99 : vector<2x32xf32>
    %101 = vector.extract_strided_slice %88 {offsets = [0, 64], sizes = [2, 32], strides = [1, 1]} : vector<2x128xf32> to vector<2x32xf32>
    %102 = math.tanh %101 : vector<2x32xf32>
    %103 = vector.extract_strided_slice %88 {offsets = [0, 96], sizes = [2, 32], strides = [1, 1]} : vector<2x128xf32> to vector<2x32xf32>
    %104 = arith.negf %103 : vector<2x32xf32>
    %105 = math.exp %104 : vector<2x32xf32>
    %cst_35 = arith.constant 1.000000e+00 : f32
    %106 = vector.broadcast %cst_35 : f32 to vector<2x32xf32>
    %107 = arith.addf %106, %105 : vector<2x32xf32>
    %108 = arith.divf %106, %107 : vector<2x32xf32>
    %109 = arith.mulf %100, %47 : vector<2x32xf32>
    %110 = arith.mulf %94, %102 : vector<2x32xf32>
    %111 = arith.addf %109, %110 : vector<2x32xf32>
    %112 = math.tanh %111 : vector<2x32xf32>
    %113 = arith.mulf %108, %112 : vector<2x32xf32>
    %114 = vector.shape_cast %113 : vector<2x32xf32> to vector<2x1x32xf32>
    "tpu.trace_start"() <{level = 10 : i32, message = "bqh,bph->bqp"}> : () -> ()
    %cst_36 = arith.constant dense<0.000000e+00> : vector<2x1x8xf32>
    %115 = tpu.matmul %114, %6, %cst_36 {dimension_numbers = #tpu.dot_dimension_numbers<[2], [2], [1], [1], [0, 0, 0, 1, 1, 1], [0], [0]>} : vector<2x1x32xf32>, vector<2x8x32xf32>, vector<2x1x8xf32> -> vector<2x1x8xf32>
    "tpu.trace_stop"() : () -> ()
    %116 = vector.shape_cast %115 : vector<2x1x8xf32> to vector<2x8xf32>
    %cst_37 = arith.constant 5.000000e-01 : f32
    %117 = vector.broadcast %cst_37 : f32 to vector<2x8xf32>
    %118 = arith.cmpf ogt, %84, %117 : vector<2x8xf32>
    %cst_38 = arith.constant -1.000000e+09 : f32
    %119 = vector.broadcast %cst_38 : f32 to vector<2x8xf32>
    %120 = arith.select %118, %119, %116 : vector<2x8xi1>, vector<2x8xf32>
    %cst_39 = arith.constant dense<0xFF800000> : vector<2xf32>
    %121 = vector.multi_reduction <maximumf>, %120, %cst_39 [1] : vector<2x8xf32> to vector<2xf32>
    %122 = vector.shape_cast %121 : vector<2xf32> to vector<2x1xf32>
    %123 = vector.broadcast %122 : vector<2x1xf32> to vector<2x8xf32>
    %124 = arith.subf %120, %123 : vector<2x8xf32>
    %125 = math.exp %124 : vector<2x8xf32>
    %cst_40 = arith.constant dense<0.000000e+00> : vector<2xf32>
    %126 = vector.multi_reduction <add>, %125, %cst_40 [1] : vector<2x8xf32> to vector<2xf32>
    %127 = vector.shape_cast %126 : vector<2xf32> to vector<2x1xf32>
    %128 = tpu.reciprocal %127 {approx = true} : vector<2x1xf32> -> vector<2x1xf32>
    %129 = vector.broadcast %128 : vector<2x1xf32> to vector<2x8xf32>
    %130 = arith.mulf %125, %129 : vector<2x8xf32>
    %131 = arith.index_cast %c1_i32 : i32 to index
    %c0_41 = arith.constant 0 : index
    %c0_42 = arith.constant 0 : index
    %132 = vector.load %arg8[%131, %c0_41, %c0_42] : memref<8x2x8xf32, #tpu.memory_space<vmem>>, vector<1x2x8xf32>
    %133 = vector.shape_cast %132 : vector<1x2x8xf32> to vector<2x8xf32>
    %134 = vector.shape_cast %130 : vector<2x8xf32> to vector<1x2x8xf32>
    tpu.vector_store %arg8[%131, %c0_41, %c0_42], %134 {strides = array<i32>} : memref<8x2x8xf32, #tpu.memory_space<vmem>>, vector<1x2x8xf32>,
    %135 = vector.broadcast %122 : vector<2x1xf32> to vector<2x8xf32>
    %136 = arith.cmpf oge, %120, %135 : vector<2x8xf32>
    %c8_i32_43 = arith.constant 8 : i32
    %137 = vector.broadcast %c8_i32_43 : i32 to vector<2x8xi32>
    %138 = arith.select %136, %7, %137 : vector<2x8xi1>, vector<2x8xi32>
    %cst_44 = arith.constant dense<2147483647> : vector<2xi32>
    %139 = vector.multi_reduction <minsi>, %138, %cst_44 [1] : vector<2x8xi32> to vector<2xi32>
    %140 = vector.shape_cast %139 : vector<2xi32> to vector<2x1xi32>
    %141 = vector.broadcast %140 : vector<2x1xi32> to vector<2x8xi32>
    %142 = arith.cmpi eq, %7, %141 : vector<2x8xi32>
    %143 = arith.extui %142 : vector<2x8xi1> to vector<2x8xi32>
    %144 = arith.sitofp %143 : vector<2x8xi32> to vector<2x8xf32>
    %145 = vector.shape_cast %144 : vector<2x8xf32> to vector<2x1x8xf32>
    "tpu.trace_start"() <{level = 10 : i32, message = "bqp,bpe->bqe"}> : () -> ()
    %cst_45 = arith.constant dense<0.000000e+00> : vector<2x1x32xf32>
    %146 = tpu.matmul %145, %0, %cst_45 {dimension_numbers = #tpu.dot_dimension_numbers<[2], [1], [1], [2], [0, 0, 0, 1, 1, 2], [0], [0]>} : vector<2x1x8xf32>, vector<2x8x32xf32>, vector<2x1x32xf32> -> vector<2x1x32xf32>
    "tpu.trace_stop"() : () -> ()
    %147 = vector.shape_cast %146 : vector<2x1x32xf32> to vector<2x32xf32>
    %148 = arith.maximumf %84, %144 : vector<2x8xf32>
    %c2_i32 = arith.constant 2 : i32
    %149 = tpu.concatenate %147, %113 in 1 : vector<2x32xf32>, vector<2x32xf32> -> vector<2x64xf32>
    %cst_46 = arith.constant dense<0.000000e+00> : vector<2x128xf32>
    %150 = tpu.matmul %149, %1, %cst_46 {dimension_numbers = #tpu.dot_dimension_numbers<[1], [0], [0], [1], [0, 0, 1, 1], [], []>} : vector<2x64xf32>, vector<64x128xf32>, vector<2x128xf32> -> vector<2x128xf32>
    %151 = vector.broadcast %2 : vector<1x128xf32> to vector<2x128xf32>
    %152 = arith.addf %150, %151 : vector<2x128xf32>
    %153 = vector.extract_strided_slice %152 {offsets = [0, 0], sizes = [2, 32], strides = [1, 1]} : vector<2x128xf32> to vector<2x32xf32>
    %154 = arith.negf %153 : vector<2x32xf32>
    %155 = math.exp %154 : vector<2x32xf32>
    %cst_47 = arith.constant 1.000000e+00 : f32
    %156 = vector.broadcast %cst_47 : f32 to vector<2x32xf32>
    %157 = arith.addf %156, %155 : vector<2x32xf32>
    %158 = arith.divf %156, %157 : vector<2x32xf32>
    %159 = vector.extract_strided_slice %152 {offsets = [0, 32], sizes = [2, 32], strides = [1, 1]} : vector<2x128xf32> to vector<2x32xf32>
    %160 = arith.negf %159 : vector<2x32xf32>
    %161 = math.exp %160 : vector<2x32xf32>
    %cst_48 = arith.constant 1.000000e+00 : f32
    %162 = vector.broadcast %cst_48 : f32 to vector<2x32xf32>
    %163 = arith.addf %162, %161 : vector<2x32xf32>
    %164 = arith.divf %162, %163 : vector<2x32xf32>
    %165 = vector.extract_strided_slice %152 {offsets = [0, 64], sizes = [2, 32], strides = [1, 1]} : vector<2x128xf32> to vector<2x32xf32>
    %166 = math.tanh %165 : vector<2x32xf32>
    %167 = vector.extract_strided_slice %152 {offsets = [0, 96], sizes = [2, 32], strides = [1, 1]} : vector<2x128xf32> to vector<2x32xf32>
    %168 = arith.negf %167 : vector<2x32xf32>
    %169 = math.exp %168 : vector<2x32xf32>
    %cst_49 = arith.constant 1.000000e+00 : f32
    %170 = vector.broadcast %cst_49 : f32 to vector<2x32xf32>
    %171 = arith.addf %170, %169 : vector<2x32xf32>
    %172 = arith.divf %170, %171 : vector<2x32xf32>
    %173 = arith.mulf %164, %111 : vector<2x32xf32>
    %174 = arith.mulf %158, %166 : vector<2x32xf32>
    %175 = arith.addf %173, %174 : vector<2x32xf32>
    %176 = math.tanh %175 : vector<2x32xf32>
    %177 = arith.mulf %172, %176 : vector<2x32xf32>
    %178 = vector.shape_cast %177 : vector<2x32xf32> to vector<2x1x32xf32>
    "tpu.trace_start"() <{level = 10 : i32, message = "bqh,bph->bqp"}> : () -> ()
    %cst_50 = arith.constant dense<0.000000e+00> : vector<2x1x8xf32>
    %179 = tpu.matmul %178, %6, %cst_50 {dimension_numbers = #tpu.dot_dimension_numbers<[2], [2], [1], [1], [0, 0, 0, 1, 1, 1], [0], [0]>} : vector<2x1x32xf32>, vector<2x8x32xf32>, vector<2x1x8xf32> -> vector<2x1x8xf32>
    "tpu.trace_stop"() : () -> ()
    %180 = vector.shape_cast %179 : vector<2x1x8xf32> to vector<2x8xf32>
    %cst_51 = arith.constant 5.000000e-01 : f32
    %181 = vector.broadcast %cst_51 : f32 to vector<2x8xf32>
    %182 = arith.cmpf ogt, %148, %181 : vector<2x8xf32>
    %cst_52 = arith.constant -1.000000e+09 : f32
    %183 = vector.broadcast %cst_52 : f32 to vector<2x8xf32>
    %184 = arith.select %182, %183, %180 : vector<2x8xi1>, vector<2x8xf32>
    %cst_53 = arith.constant dense<0xFF800000> : vector<2xf32>
    %185 = vector.multi_reduction <maximumf>, %184, %cst_53 [1] : vector<2x8xf32> to vector<2xf32>
    %186 = vector.shape_cast %185 : vector<2xf32> to vector<2x1xf32>
    %187 = vector.broadcast %186 : vector<2x1xf32> to vector<2x8xf32>
    %188 = arith.subf %184, %187 : vector<2x8xf32>
    %189 = math.exp %188 : vector<2x8xf32>
    %cst_54 = arith.constant dense<0.000000e+00> : vector<2xf32>
    %190 = vector.multi_reduction <add>, %189, %cst_54 [1] : vector<2x8xf32> to vector<2xf32>
    %191 = vector.shape_cast %190 : vector<2xf32> to vector<2x1xf32>
    %192 = tpu.reciprocal %191 {approx = true} : vector<2x1xf32> -> vector<2x1xf32>
    %193 = vector.broadcast %192 : vector<2x1xf32> to vector<2x8xf32>
    %194 = arith.mulf %189, %193 : vector<2x8xf32>
    %195 = arith.index_cast %c2_i32 : i32 to index
    %c0_55 = arith.constant 0 : index
    %c0_56 = arith.constant 0 : index
    %196 = vector.load %arg8[%195, %c0_55, %c0_56] : memref<8x2x8xf32, #tpu.memory_space<vmem>>, vector<1x2x8xf32>
    %197 = vector.shape_cast %196 : vector<1x2x8xf32> to vector<2x8xf32>
    %198 = vector.shape_cast %194 : vector<2x8xf32> to vector<1x2x8xf32>
    tpu.vector_store %arg8[%195, %c0_55, %c0_56], %198 {strides = array<i32>} : memref<8x2x8xf32, #tpu.memory_space<vmem>>, vector<1x2x8xf32>,
    %199 = vector.broadcast %186 : vector<2x1xf32> to vector<2x8xf32>
    %200 = arith.cmpf oge, %184, %199 : vector<2x8xf32>
    %c8_i32_57 = arith.constant 8 : i32
    %201 = vector.broadcast %c8_i32_57 : i32 to vector<2x8xi32>
    %202 = arith.select %200, %7, %201 : vector<2x8xi1>, vector<2x8xi32>
    %cst_58 = arith.constant dense<2147483647> : vector<2xi32>
    %203 = vector.multi_reduction <minsi>, %202, %cst_58 [1] : vector<2x8xi32> to vector<2xi32>
    %204 = vector.shape_cast %203 : vector<2xi32> to vector<2x1xi32>
    %205 = vector.broadcast %204 : vector<2x1xi32> to vector<2x8xi32>
    %206 = arith.cmpi eq, %7, %205 : vector<2x8xi32>
    %207 = arith.extui %206 : vector<2x8xi1> to vector<2x8xi32>
    %208 = arith.sitofp %207 : vector<2x8xi32> to vector<2x8xf32>
    %209 = vector.shape_cast %208 : vector<2x8xf32> to vector<2x1x8xf32>
    "tpu.trace_start"() <{level = 10 : i32, message = "bqp,bpe->bqe"}> : () -> ()
    %cst_59 = arith.constant dense<0.000000e+00> : vector<2x1x32xf32>
    %210 = tpu.matmul %209, %0, %cst_59 {dimension_numbers = #tpu.dot_dimension_numbers<[2], [1], [1], [2], [0, 0, 0, 1, 1, 2], [0], [0]>} : vector<2x1x8xf32>, vector<2x8x32xf32>, vector<2x1x32xf32> -> vector<2x1x32xf32>
    "tpu.trace_stop"() : () -> ()
    %211 = vector.shape_cast %210 : vector<2x1x32xf32> to vector<2x32xf32>
    %212 = arith.maximumf %148, %208 : vector<2x8xf32>
    %c3_i32 = arith.constant 3 : i32
    %213 = tpu.concatenate %211, %177 in 1 : vector<2x32xf32>, vector<2x32xf32> -> vector<2x64xf32>
    %cst_60 = arith.constant dense<0.000000e+00> : vector<2x128xf32>
    %214 = tpu.matmul %213, %1, %cst_60 {dimension_numbers = #tpu.dot_dimension_numbers<[1], [0], [0], [1], [0, 0, 1, 1], [], []>} : vector<2x64xf32>, vector<64x128xf32>, vector<2x128xf32> -> vector<2x128xf32>
    %215 = vector.broadcast %2 : vector<1x128xf32> to vector<2x128xf32>
    %216 = arith.addf %214, %215 : vector<2x128xf32>
    %217 = vector.extract_strided_slice %216 {offsets = [0, 0], sizes = [2, 32], strides = [1, 1]} : vector<2x128xf32> to vector<2x32xf32>
    %218 = arith.negf %217 : vector<2x32xf32>
    %219 = math.exp %218 : vector<2x32xf32>
    %cst_61 = arith.constant 1.000000e+00 : f32
    %220 = vector.broadcast %cst_61 : f32 to vector<2x32xf32>
    %221 = arith.addf %220, %219 : vector<2x32xf32>
    %222 = arith.divf %220, %221 : vector<2x32xf32>
    %223 = vector.extract_strided_slice %216 {offsets = [0, 32], sizes = [2, 32], strides = [1, 1]} : vector<2x128xf32> to vector<2x32xf32>
    %224 = arith.negf %223 : vector<2x32xf32>
    %225 = math.exp %224 : vector<2x32xf32>
    %cst_62 = arith.constant 1.000000e+00 : f32
    %226 = vector.broadcast %cst_62 : f32 to vector<2x32xf32>
    %227 = arith.addf %226, %225 : vector<2x32xf32>
    %228 = arith.divf %226, %227 : vector<2x32xf32>
    %229 = vector.extract_strided_slice %216 {offsets = [0, 64], sizes = [2, 32], strides = [1, 1]} : vector<2x128xf32> to vector<2x32xf32>
    %230 = math.tanh %229 : vector<2x32xf32>
    %231 = vector.extract_strided_slice %216 {offsets = [0, 96], sizes = [2, 32], strides = [1, 1]} : vector<2x128xf32> to vector<2x32xf32>
    %232 = arith.negf %231 : vector<2x32xf32>
    %233 = math.exp %232 : vector<2x32xf32>
    %cst_63 = arith.constant 1.000000e+00 : f32
    %234 = vector.broadcast %cst_63 : f32 to vector<2x32xf32>
    %235 = arith.addf %234, %233 : vector<2x32xf32>
    %236 = arith.divf %234, %235 : vector<2x32xf32>
    %237 = arith.mulf %228, %175 : vector<2x32xf32>
    %238 = arith.mulf %222, %230 : vector<2x32xf32>
    %239 = arith.addf %237, %238 : vector<2x32xf32>
    %240 = math.tanh %239 : vector<2x32xf32>
    %241 = arith.mulf %236, %240 : vector<2x32xf32>
    %242 = vector.shape_cast %241 : vector<2x32xf32> to vector<2x1x32xf32>
    "tpu.trace_start"() <{level = 10 : i32, message = "bqh,bph->bqp"}> : () -> ()
    %cst_64 = arith.constant dense<0.000000e+00> : vector<2x1x8xf32>
    %243 = tpu.matmul %242, %6, %cst_64 {dimension_numbers = #tpu.dot_dimension_numbers<[2], [2], [1], [1], [0, 0, 0, 1, 1, 1], [0], [0]>} : vector<2x1x32xf32>, vector<2x8x32xf32>, vector<2x1x8xf32> -> vector<2x1x8xf32>
    "tpu.trace_stop"() : () -> ()
    %244 = vector.shape_cast %243 : vector<2x1x8xf32> to vector<2x8xf32>
    %cst_65 = arith.constant 5.000000e-01 : f32
    %245 = vector.broadcast %cst_65 : f32 to vector<2x8xf32>
    %246 = arith.cmpf ogt, %212, %245 : vector<2x8xf32>
    %cst_66 = arith.constant -1.000000e+09 : f32
    %247 = vector.broadcast %cst_66 : f32 to vector<2x8xf32>
    %248 = arith.select %246, %247, %244 : vector<2x8xi1>, vector<2x8xf32>
    %cst_67 = arith.constant dense<0xFF800000> : vector<2xf32>
    %249 = vector.multi_reduction <maximumf>, %248, %cst_67 [1] : vector<2x8xf32> to vector<2xf32>
    %250 = vector.shape_cast %249 : vector<2xf32> to vector<2x1xf32>
    %251 = vector.broadcast %250 : vector<2x1xf32> to vector<2x8xf32>
    %252 = arith.subf %248, %251 : vector<2x8xf32>
    %253 = math.exp %252 : vector<2x8xf32>
    %cst_68 = arith.constant dense<0.000000e+00> : vector<2xf32>
    %254 = vector.multi_reduction <add>, %253, %cst_68 [1] : vector<2x8xf32> to vector<2xf32>
    %255 = vector.shape_cast %254 : vector<2xf32> to vector<2x1xf32>
    %256 = tpu.reciprocal %255 {approx = true} : vector<2x1xf32> -> vector<2x1xf32>
    %257 = vector.broadcast %256 : vector<2x1xf32> to vector<2x8xf32>
    %258 = arith.mulf %253, %257 : vector<2x8xf32>
    %259 = arith.index_cast %c3_i32 : i32 to index
    %c0_69 = arith.constant 0 : index
    %c0_70 = arith.constant 0 : index
    %260 = vector.load %arg8[%259, %c0_69, %c0_70] : memref<8x2x8xf32, #tpu.memory_space<vmem>>, vector<1x2x8xf32>
    %261 = vector.shape_cast %260 : vector<1x2x8xf32> to vector<2x8xf32>
    %262 = vector.shape_cast %258 : vector<2x8xf32> to vector<1x2x8xf32>
    tpu.vector_store %arg8[%259, %c0_69, %c0_70], %262 {strides = array<i32>} : memref<8x2x8xf32, #tpu.memory_space<vmem>>, vector<1x2x8xf32>,
    %263 = vector.broadcast %250 : vector<2x1xf32> to vector<2x8xf32>
    %264 = arith.cmpf oge, %248, %263 : vector<2x8xf32>
    %c8_i32_71 = arith.constant 8 : i32
    %265 = vector.broadcast %c8_i32_71 : i32 to vector<2x8xi32>
    %266 = arith.select %264, %7, %265 : vector<2x8xi1>, vector<2x8xi32>
    %cst_72 = arith.constant dense<2147483647> : vector<2xi32>
    %267 = vector.multi_reduction <minsi>, %266, %cst_72 [1] : vector<2x8xi32> to vector<2xi32>
    %268 = vector.shape_cast %267 : vector<2xi32> to vector<2x1xi32>
    %269 = vector.broadcast %268 : vector<2x1xi32> to vector<2x8xi32>
    %270 = arith.cmpi eq, %7, %269 : vector<2x8xi32>
    %271 = arith.extui %270 : vector<2x8xi1> to vector<2x8xi32>
    %272 = arith.sitofp %271 : vector<2x8xi32> to vector<2x8xf32>
    %273 = vector.shape_cast %272 : vector<2x8xf32> to vector<2x1x8xf32>
    "tpu.trace_start"() <{level = 10 : i32, message = "bqp,bpe->bqe"}> : () -> ()
    %cst_73 = arith.constant dense<0.000000e+00> : vector<2x1x32xf32>
    %274 = tpu.matmul %273, %0, %cst_73 {dimension_numbers = #tpu.dot_dimension_numbers<[2], [1], [1], [2], [0, 0, 0, 1, 1, 2], [0], [0]>} : vector<2x1x8xf32>, vector<2x8x32xf32>, vector<2x1x32xf32> -> vector<2x1x32xf32>
    "tpu.trace_stop"() : () -> ()
    %275 = vector.shape_cast %274 : vector<2x1x32xf32> to vector<2x32xf32>
    %276 = arith.maximumf %212, %272 : vector<2x8xf32>
    %c4_i32 = arith.constant 4 : i32
    %277 = tpu.concatenate %275, %241 in 1 : vector<2x32xf32>, vector<2x32xf32> -> vector<2x64xf32>
    %cst_74 = arith.constant dense<0.000000e+00> : vector<2x128xf32>
    %278 = tpu.matmul %277, %1, %cst_74 {dimension_numbers = #tpu.dot_dimension_numbers<[1], [0], [0], [1], [0, 0, 1, 1], [], []>} : vector<2x64xf32>, vector<64x128xf32>, vector<2x128xf32> -> vector<2x128xf32>
    %279 = vector.broadcast %2 : vector<1x128xf32> to vector<2x128xf32>
    %280 = arith.addf %278, %279 : vector<2x128xf32>
    %281 = vector.extract_strided_slice %280 {offsets = [0, 0], sizes = [2, 32], strides = [1, 1]} : vector<2x128xf32> to vector<2x32xf32>
    %282 = arith.negf %281 : vector<2x32xf32>
    %283 = math.exp %282 : vector<2x32xf32>
    %cst_75 = arith.constant 1.000000e+00 : f32
    %284 = vector.broadcast %cst_75 : f32 to vector<2x32xf32>
    %285 = arith.addf %284, %283 : vector<2x32xf32>
    %286 = arith.divf %284, %285 : vector<2x32xf32>
    %287 = vector.extract_strided_slice %280 {offsets = [0, 32], sizes = [2, 32], strides = [1, 1]} : vector<2x128xf32> to vector<2x32xf32>
    %288 = arith.negf %287 : vector<2x32xf32>
    %289 = math.exp %288 : vector<2x32xf32>
    %cst_76 = arith.constant 1.000000e+00 : f32
    %290 = vector.broadcast %cst_76 : f32 to vector<2x32xf32>
    %291 = arith.addf %290, %289 : vector<2x32xf32>
    %292 = arith.divf %290, %291 : vector<2x32xf32>
    %293 = vector.extract_strided_slice %280 {offsets = [0, 64], sizes = [2, 32], strides = [1, 1]} : vector<2x128xf32> to vector<2x32xf32>
    %294 = math.tanh %293 : vector<2x32xf32>
    %295 = vector.extract_strided_slice %280 {offsets = [0, 96], sizes = [2, 32], strides = [1, 1]} : vector<2x128xf32> to vector<2x32xf32>
    %296 = arith.negf %295 : vector<2x32xf32>
    %297 = math.exp %296 : vector<2x32xf32>
    %cst_77 = arith.constant 1.000000e+00 : f32
    %298 = vector.broadcast %cst_77 : f32 to vector<2x32xf32>
    %299 = arith.addf %298, %297 : vector<2x32xf32>
    %300 = arith.divf %298, %299 : vector<2x32xf32>
    %301 = arith.mulf %292, %239 : vector<2x32xf32>
    %302 = arith.mulf %286, %294 : vector<2x32xf32>
    %303 = arith.addf %301, %302 : vector<2x32xf32>
    %304 = math.tanh %303 : vector<2x32xf32>
    %305 = arith.mulf %300, %304 : vector<2x32xf32>
    %306 = vector.shape_cast %305 : vector<2x32xf32> to vector<2x1x32xf32>
    "tpu.trace_start"() <{level = 10 : i32, message = "bqh,bph->bqp"}> : () -> ()
    %cst_78 = arith.constant dense<0.000000e+00> : vector<2x1x8xf32>
    %307 = tpu.matmul %306, %6, %cst_78 {dimension_numbers = #tpu.dot_dimension_numbers<[2], [2], [1], [1], [0, 0, 0, 1, 1, 1], [0], [0]>} : vector<2x1x32xf32>, vector<2x8x32xf32>, vector<2x1x8xf32> -> vector<2x1x8xf32>
    "tpu.trace_stop"() : () -> ()
    %308 = vector.shape_cast %307 : vector<2x1x8xf32> to vector<2x8xf32>
    %cst_79 = arith.constant 5.000000e-01 : f32
    %309 = vector.broadcast %cst_79 : f32 to vector<2x8xf32>
    %310 = arith.cmpf ogt, %276, %309 : vector<2x8xf32>
    %cst_80 = arith.constant -1.000000e+09 : f32
    %311 = vector.broadcast %cst_80 : f32 to vector<2x8xf32>
    %312 = arith.select %310, %311, %308 : vector<2x8xi1>, vector<2x8xf32>
    %cst_81 = arith.constant dense<0xFF800000> : vector<2xf32>
    %313 = vector.multi_reduction <maximumf>, %312, %cst_81 [1] : vector<2x8xf32> to vector<2xf32>
    %314 = vector.shape_cast %313 : vector<2xf32> to vector<2x1xf32>
    %315 = vector.broadcast %314 : vector<2x1xf32> to vector<2x8xf32>
    %316 = arith.subf %312, %315 : vector<2x8xf32>
    %317 = math.exp %316 : vector<2x8xf32>
    %cst_82 = arith.constant dense<0.000000e+00> : vector<2xf32>
    %318 = vector.multi_reduction <add>, %317, %cst_82 [1] : vector<2x8xf32> to vector<2xf32>
    %319 = vector.shape_cast %318 : vector<2xf32> to vector<2x1xf32>
    %320 = tpu.reciprocal %319 {approx = true} : vector<2x1xf32> -> vector<2x1xf32>
    %321 = vector.broadcast %320 : vector<2x1xf32> to vector<2x8xf32>
    %322 = arith.mulf %317, %321 : vector<2x8xf32>
    %323 = arith.index_cast %c4_i32 : i32 to index
    %c0_83 = arith.constant 0 : index
    %c0_84 = arith.constant 0 : index
    %324 = vector.load %arg8[%323, %c0_83, %c0_84] : memref<8x2x8xf32, #tpu.memory_space<vmem>>, vector<1x2x8xf32>
    %325 = vector.shape_cast %324 : vector<1x2x8xf32> to vector<2x8xf32>
    %326 = vector.shape_cast %322 : vector<2x8xf32> to vector<1x2x8xf32>
    tpu.vector_store %arg8[%323, %c0_83, %c0_84], %326 {strides = array<i32>} : memref<8x2x8xf32, #tpu.memory_space<vmem>>, vector<1x2x8xf32>,
    %327 = vector.broadcast %314 : vector<2x1xf32> to vector<2x8xf32>
    %328 = arith.cmpf oge, %312, %327 : vector<2x8xf32>
    %c8_i32_85 = arith.constant 8 : i32
    %329 = vector.broadcast %c8_i32_85 : i32 to vector<2x8xi32>
    %330 = arith.select %328, %7, %329 : vector<2x8xi1>, vector<2x8xi32>
    %cst_86 = arith.constant dense<2147483647> : vector<2xi32>
    %331 = vector.multi_reduction <minsi>, %330, %cst_86 [1] : vector<2x8xi32> to vector<2xi32>
    %332 = vector.shape_cast %331 : vector<2xi32> to vector<2x1xi32>
    %333 = vector.broadcast %332 : vector<2x1xi32> to vector<2x8xi32>
    %334 = arith.cmpi eq, %7, %333 : vector<2x8xi32>
    %335 = arith.extui %334 : vector<2x8xi1> to vector<2x8xi32>
    %336 = arith.sitofp %335 : vector<2x8xi32> to vector<2x8xf32>
    %337 = vector.shape_cast %336 : vector<2x8xf32> to vector<2x1x8xf32>
    "tpu.trace_start"() <{level = 10 : i32, message = "bqp,bpe->bqe"}> : () -> ()
    %cst_87 = arith.constant dense<0.000000e+00> : vector<2x1x32xf32>
    %338 = tpu.matmul %337, %0, %cst_87 {dimension_numbers = #tpu.dot_dimension_numbers<[2], [1], [1], [2], [0, 0, 0, 1, 1, 2], [0], [0]>} : vector<2x1x8xf32>, vector<2x8x32xf32>, vector<2x1x32xf32> -> vector<2x1x32xf32>
    "tpu.trace_stop"() : () -> ()
    %339 = vector.shape_cast %338 : vector<2x1x32xf32> to vector<2x32xf32>
    %340 = arith.maximumf %276, %336 : vector<2x8xf32>
    %c5_i32 = arith.constant 5 : i32
    %341 = tpu.concatenate %339, %305 in 1 : vector<2x32xf32>, vector<2x32xf32> -> vector<2x64xf32>
    %cst_88 = arith.constant dense<0.000000e+00> : vector<2x128xf32>
    %342 = tpu.matmul %341, %1, %cst_88 {dimension_numbers = #tpu.dot_dimension_numbers<[1], [0], [0], [1], [0, 0, 1, 1], [], []>} : vector<2x64xf32>, vector<64x128xf32>, vector<2x128xf32> -> vector<2x128xf32>
    %343 = vector.broadcast %2 : vector<1x128xf32> to vector<2x128xf32>
    %344 = arith.addf %342, %343 : vector<2x128xf32>
    %345 = vector.extract_strided_slice %344 {offsets = [0, 0], sizes = [2, 32], strides = [1, 1]} : vector<2x128xf32> to vector<2x32xf32>
    %346 = arith.negf %345 : vector<2x32xf32>
    %347 = math.exp %346 : vector<2x32xf32>
    %cst_89 = arith.constant 1.000000e+00 : f32
    %348 = vector.broadcast %cst_89 : f32 to vector<2x32xf32>
    %349 = arith.addf %348, %347 : vector<2x32xf32>
    %350 = arith.divf %348, %349 : vector<2x32xf32>
    %351 = vector.extract_strided_slice %344 {offsets = [0, 32], sizes = [2, 32], strides = [1, 1]} : vector<2x128xf32> to vector<2x32xf32>
    %352 = arith.negf %351 : vector<2x32xf32>
    %353 = math.exp %352 : vector<2x32xf32>
    %cst_90 = arith.constant 1.000000e+00 : f32
    %354 = vector.broadcast %cst_90 : f32 to vector<2x32xf32>
    %355 = arith.addf %354, %353 : vector<2x32xf32>
    %356 = arith.divf %354, %355 : vector<2x32xf32>
    %357 = vector.extract_strided_slice %344 {offsets = [0, 64], sizes = [2, 32], strides = [1, 1]} : vector<2x128xf32> to vector<2x32xf32>
    %358 = math.tanh %357 : vector<2x32xf32>
    %359 = vector.extract_strided_slice %344 {offsets = [0, 96], sizes = [2, 32], strides = [1, 1]} : vector<2x128xf32> to vector<2x32xf32>
    %360 = arith.negf %359 : vector<2x32xf32>
    %361 = math.exp %360 : vector<2x32xf32>
    %cst_91 = arith.constant 1.000000e+00 : f32
    %362 = vector.broadcast %cst_91 : f32 to vector<2x32xf32>
    %363 = arith.addf %362, %361 : vector<2x32xf32>
    %364 = arith.divf %362, %363 : vector<2x32xf32>
    %365 = arith.mulf %356, %303 : vector<2x32xf32>
    %366 = arith.mulf %350, %358 : vector<2x32xf32>
    %367 = arith.addf %365, %366 : vector<2x32xf32>
    %368 = math.tanh %367 : vector<2x32xf32>
    %369 = arith.mulf %364, %368 : vector<2x32xf32>
    %370 = vector.shape_cast %369 : vector<2x32xf32> to vector<2x1x32xf32>
    "tpu.trace_start"() <{level = 10 : i32, message = "bqh,bph->bqp"}> : () -> ()
    %cst_92 = arith.constant dense<0.000000e+00> : vector<2x1x8xf32>
    %371 = tpu.matmul %370, %6, %cst_92 {dimension_numbers = #tpu.dot_dimension_numbers<[2], [2], [1], [1], [0, 0, 0, 1, 1, 1], [0], [0]>} : vector<2x1x32xf32>, vector<2x8x32xf32>, vector<2x1x8xf32> -> vector<2x1x8xf32>
    "tpu.trace_stop"() : () -> ()
    %372 = vector.shape_cast %371 : vector<2x1x8xf32> to vector<2x8xf32>
    %cst_93 = arith.constant 5.000000e-01 : f32
    %373 = vector.broadcast %cst_93 : f32 to vector<2x8xf32>
    %374 = arith.cmpf ogt, %340, %373 : vector<2x8xf32>
    %cst_94 = arith.constant -1.000000e+09 : f32
    %375 = vector.broadcast %cst_94 : f32 to vector<2x8xf32>
    %376 = arith.select %374, %375, %372 : vector<2x8xi1>, vector<2x8xf32>
    %cst_95 = arith.constant dense<0xFF800000> : vector<2xf32>
    %377 = vector.multi_reduction <maximumf>, %376, %cst_95 [1] : vector<2x8xf32> to vector<2xf32>
    %378 = vector.shape_cast %377 : vector<2xf32> to vector<2x1xf32>
    %379 = vector.broadcast %378 : vector<2x1xf32> to vector<2x8xf32>
    %380 = arith.subf %376, %379 : vector<2x8xf32>
    %381 = math.exp %380 : vector<2x8xf32>
    %cst_96 = arith.constant dense<0.000000e+00> : vector<2xf32>
    %382 = vector.multi_reduction <add>, %381, %cst_96 [1] : vector<2x8xf32> to vector<2xf32>
    %383 = vector.shape_cast %382 : vector<2xf32> to vector<2x1xf32>
    %384 = tpu.reciprocal %383 {approx = true} : vector<2x1xf32> -> vector<2x1xf32>
    %385 = vector.broadcast %384 : vector<2x1xf32> to vector<2x8xf32>
    %386 = arith.mulf %381, %385 : vector<2x8xf32>
    %387 = arith.index_cast %c5_i32 : i32 to index
    %c0_97 = arith.constant 0 : index
    %c0_98 = arith.constant 0 : index
    %388 = vector.load %arg8[%387, %c0_97, %c0_98] : memref<8x2x8xf32, #tpu.memory_space<vmem>>, vector<1x2x8xf32>
    %389 = vector.shape_cast %388 : vector<1x2x8xf32> to vector<2x8xf32>
    %390 = vector.shape_cast %386 : vector<2x8xf32> to vector<1x2x8xf32>
    tpu.vector_store %arg8[%387, %c0_97, %c0_98], %390 {strides = array<i32>} : memref<8x2x8xf32, #tpu.memory_space<vmem>>, vector<1x2x8xf32>,
    %391 = vector.broadcast %378 : vector<2x1xf32> to vector<2x8xf32>
    %392 = arith.cmpf oge, %376, %391 : vector<2x8xf32>
    %c8_i32_99 = arith.constant 8 : i32
    %393 = vector.broadcast %c8_i32_99 : i32 to vector<2x8xi32>
    %394 = arith.select %392, %7, %393 : vector<2x8xi1>, vector<2x8xi32>
    %cst_100 = arith.constant dense<2147483647> : vector<2xi32>
    %395 = vector.multi_reduction <minsi>, %394, %cst_100 [1] : vector<2x8xi32> to vector<2xi32>
    %396 = vector.shape_cast %395 : vector<2xi32> to vector<2x1xi32>
    %397 = vector.broadcast %396 : vector<2x1xi32> to vector<2x8xi32>
    %398 = arith.cmpi eq, %7, %397 : vector<2x8xi32>
    %399 = arith.extui %398 : vector<2x8xi1> to vector<2x8xi32>
    %400 = arith.sitofp %399 : vector<2x8xi32> to vector<2x8xf32>
    %401 = vector.shape_cast %400 : vector<2x8xf32> to vector<2x1x8xf32>
    "tpu.trace_start"() <{level = 10 : i32, message = "bqp,bpe->bqe"}> : () -> ()
    %cst_101 = arith.constant dense<0.000000e+00> : vector<2x1x32xf32>
    %402 = tpu.matmul %401, %0, %cst_101 {dimension_numbers = #tpu.dot_dimension_numbers<[2], [1], [1], [2], [0, 0, 0, 1, 1, 2], [0], [0]>} : vector<2x1x8xf32>, vector<2x8x32xf32>, vector<2x1x32xf32> -> vector<2x1x32xf32>
    "tpu.trace_stop"() : () -> ()
    %403 = vector.shape_cast %402 : vector<2x1x32xf32> to vector<2x32xf32>
    %404 = arith.maximumf %340, %400 : vector<2x8xf32>
    %c6_i32 = arith.constant 6 : i32
    %405 = tpu.concatenate %403, %369 in 1 : vector<2x32xf32>, vector<2x32xf32> -> vector<2x64xf32>
    %cst_102 = arith.constant dense<0.000000e+00> : vector<2x128xf32>
    %406 = tpu.matmul %405, %1, %cst_102 {dimension_numbers = #tpu.dot_dimension_numbers<[1], [0], [0], [1], [0, 0, 1, 1], [], []>} : vector<2x64xf32>, vector<64x128xf32>, vector<2x128xf32> -> vector<2x128xf32>
    %407 = vector.broadcast %2 : vector<1x128xf32> to vector<2x128xf32>
    %408 = arith.addf %406, %407 : vector<2x128xf32>
    %409 = vector.extract_strided_slice %408 {offsets = [0, 0], sizes = [2, 32], strides = [1, 1]} : vector<2x128xf32> to vector<2x32xf32>
    %410 = arith.negf %409 : vector<2x32xf32>
    %411 = math.exp %410 : vector<2x32xf32>
    %cst_103 = arith.constant 1.000000e+00 : f32
    %412 = vector.broadcast %cst_103 : f32 to vector<2x32xf32>
    %413 = arith.addf %412, %411 : vector<2x32xf32>
    %414 = arith.divf %412, %413 : vector<2x32xf32>
    %415 = vector.extract_strided_slice %408 {offsets = [0, 32], sizes = [2, 32], strides = [1, 1]} : vector<2x128xf32> to vector<2x32xf32>
    %416 = arith.negf %415 : vector<2x32xf32>
    %417 = math.exp %416 : vector<2x32xf32>
    %cst_104 = arith.constant 1.000000e+00 : f32
    %418 = vector.broadcast %cst_104 : f32 to vector<2x32xf32>
    %419 = arith.addf %418, %417 : vector<2x32xf32>
    %420 = arith.divf %418, %419 : vector<2x32xf32>
    %421 = vector.extract_strided_slice %408 {offsets = [0, 64], sizes = [2, 32], strides = [1, 1]} : vector<2x128xf32> to vector<2x32xf32>
    %422 = math.tanh %421 : vector<2x32xf32>
    %423 = vector.extract_strided_slice %408 {offsets = [0, 96], sizes = [2, 32], strides = [1, 1]} : vector<2x128xf32> to vector<2x32xf32>
    %424 = arith.negf %423 : vector<2x32xf32>
    %425 = math.exp %424 : vector<2x32xf32>
    %cst_105 = arith.constant 1.000000e+00 : f32
    %426 = vector.broadcast %cst_105 : f32 to vector<2x32xf32>
    %427 = arith.addf %426, %425 : vector<2x32xf32>
    %428 = arith.divf %426, %427 : vector<2x32xf32>
    %429 = arith.mulf %420, %367 : vector<2x32xf32>
    %430 = arith.mulf %414, %422 : vector<2x32xf32>
    %431 = arith.addf %429, %430 : vector<2x32xf32>
    %432 = math.tanh %431 : vector<2x32xf32>
    %433 = arith.mulf %428, %432 : vector<2x32xf32>
    %434 = vector.shape_cast %433 : vector<2x32xf32> to vector<2x1x32xf32>
    "tpu.trace_start"() <{level = 10 : i32, message = "bqh,bph->bqp"}> : () -> ()
    %cst_106 = arith.constant dense<0.000000e+00> : vector<2x1x8xf32>
    %435 = tpu.matmul %434, %6, %cst_106 {dimension_numbers = #tpu.dot_dimension_numbers<[2], [2], [1], [1], [0, 0, 0, 1, 1, 1], [0], [0]>} : vector<2x1x32xf32>, vector<2x8x32xf32>, vector<2x1x8xf32> -> vector<2x1x8xf32>
    "tpu.trace_stop"() : () -> ()
    %436 = vector.shape_cast %435 : vector<2x1x8xf32> to vector<2x8xf32>
    %cst_107 = arith.constant 5.000000e-01 : f32
    %437 = vector.broadcast %cst_107 : f32 to vector<2x8xf32>
    %438 = arith.cmpf ogt, %404, %437 : vector<2x8xf32>
    %cst_108 = arith.constant -1.000000e+09 : f32
    %439 = vector.broadcast %cst_108 : f32 to vector<2x8xf32>
    %440 = arith.select %438, %439, %436 : vector<2x8xi1>, vector<2x8xf32>
    %cst_109 = arith.constant dense<0xFF800000> : vector<2xf32>
    %441 = vector.multi_reduction <maximumf>, %440, %cst_109 [1] : vector<2x8xf32> to vector<2xf32>
    %442 = vector.shape_cast %441 : vector<2xf32> to vector<2x1xf32>
    %443 = vector.broadcast %442 : vector<2x1xf32> to vector<2x8xf32>
    %444 = arith.subf %440, %443 : vector<2x8xf32>
    %445 = math.exp %444 : vector<2x8xf32>
    %cst_110 = arith.constant dense<0.000000e+00> : vector<2xf32>
    %446 = vector.multi_reduction <add>, %445, %cst_110 [1] : vector<2x8xf32> to vector<2xf32>
    %447 = vector.shape_cast %446 : vector<2xf32> to vector<2x1xf32>
    %448 = tpu.reciprocal %447 {approx = true} : vector<2x1xf32> -> vector<2x1xf32>
    %449 = vector.broadcast %448 : vector<2x1xf32> to vector<2x8xf32>
    %450 = arith.mulf %445, %449 : vector<2x8xf32>
    %451 = arith.index_cast %c6_i32 : i32 to index
    %c0_111 = arith.constant 0 : index
    %c0_112 = arith.constant 0 : index
    %452 = vector.load %arg8[%451, %c0_111, %c0_112] : memref<8x2x8xf32, #tpu.memory_space<vmem>>, vector<1x2x8xf32>
    %453 = vector.shape_cast %452 : vector<1x2x8xf32> to vector<2x8xf32>
    %454 = vector.shape_cast %450 : vector<2x8xf32> to vector<1x2x8xf32>
    tpu.vector_store %arg8[%451, %c0_111, %c0_112], %454 {strides = array<i32>} : memref<8x2x8xf32, #tpu.memory_space<vmem>>, vector<1x2x8xf32>,
    %455 = vector.broadcast %442 : vector<2x1xf32> to vector<2x8xf32>
    %456 = arith.cmpf oge, %440, %455 : vector<2x8xf32>
    %c8_i32_113 = arith.constant 8 : i32
    %457 = vector.broadcast %c8_i32_113 : i32 to vector<2x8xi32>
    %458 = arith.select %456, %7, %457 : vector<2x8xi1>, vector<2x8xi32>
    %cst_114 = arith.constant dense<2147483647> : vector<2xi32>
    %459 = vector.multi_reduction <minsi>, %458, %cst_114 [1] : vector<2x8xi32> to vector<2xi32>
    %460 = vector.shape_cast %459 : vector<2xi32> to vector<2x1xi32>
    %461 = vector.broadcast %460 : vector<2x1xi32> to vector<2x8xi32>
    %462 = arith.cmpi eq, %7, %461 : vector<2x8xi32>
    %463 = arith.extui %462 : vector<2x8xi1> to vector<2x8xi32>
    %464 = arith.sitofp %463 : vector<2x8xi32> to vector<2x8xf32>
    %465 = vector.shape_cast %464 : vector<2x8xf32> to vector<2x1x8xf32>
    "tpu.trace_start"() <{level = 10 : i32, message = "bqp,bpe->bqe"}> : () -> ()
    %cst_115 = arith.constant dense<0.000000e+00> : vector<2x1x32xf32>
    %466 = tpu.matmul %465, %0, %cst_115 {dimension_numbers = #tpu.dot_dimension_numbers<[2], [1], [1], [2], [0, 0, 0, 1, 1, 2], [0], [0]>} : vector<2x1x8xf32>, vector<2x8x32xf32>, vector<2x1x32xf32> -> vector<2x1x32xf32>
    "tpu.trace_stop"() : () -> ()
    %467 = vector.shape_cast %466 : vector<2x1x32xf32> to vector<2x32xf32>
    %468 = arith.maximumf %404, %464 : vector<2x8xf32>
    %c7_i32 = arith.constant 7 : i32
    %469 = tpu.concatenate %467, %433 in 1 : vector<2x32xf32>, vector<2x32xf32> -> vector<2x64xf32>
    %cst_116 = arith.constant dense<0.000000e+00> : vector<2x128xf32>
    %470 = tpu.matmul %469, %1, %cst_116 {dimension_numbers = #tpu.dot_dimension_numbers<[1], [0], [0], [1], [0, 0, 1, 1], [], []>} : vector<2x64xf32>, vector<64x128xf32>, vector<2x128xf32> -> vector<2x128xf32>
    %471 = vector.broadcast %2 : vector<1x128xf32> to vector<2x128xf32>
    %472 = arith.addf %470, %471 : vector<2x128xf32>
    %473 = vector.extract_strided_slice %472 {offsets = [0, 0], sizes = [2, 32], strides = [1, 1]} : vector<2x128xf32> to vector<2x32xf32>
    %474 = arith.negf %473 : vector<2x32xf32>
    %475 = math.exp %474 : vector<2x32xf32>
    %cst_117 = arith.constant 1.000000e+00 : f32
    %476 = vector.broadcast %cst_117 : f32 to vector<2x32xf32>
    %477 = arith.addf %476, %475 : vector<2x32xf32>
    %478 = arith.divf %476, %477 : vector<2x32xf32>
    %479 = vector.extract_strided_slice %472 {offsets = [0, 32], sizes = [2, 32], strides = [1, 1]} : vector<2x128xf32> to vector<2x32xf32>
    %480 = arith.negf %479 : vector<2x32xf32>
    %481 = math.exp %480 : vector<2x32xf32>
    %cst_118 = arith.constant 1.000000e+00 : f32
    %482 = vector.broadcast %cst_118 : f32 to vector<2x32xf32>
    %483 = arith.addf %482, %481 : vector<2x32xf32>
    %484 = arith.divf %482, %483 : vector<2x32xf32>
    %485 = vector.extract_strided_slice %472 {offsets = [0, 64], sizes = [2, 32], strides = [1, 1]} : vector<2x128xf32> to vector<2x32xf32>
    %486 = math.tanh %485 : vector<2x32xf32>
    %487 = vector.extract_strided_slice %472 {offsets = [0, 96], sizes = [2, 32], strides = [1, 1]} : vector<2x128xf32> to vector<2x32xf32>
    %488 = arith.negf %487 : vector<2x32xf32>
    %489 = math.exp %488 : vector<2x32xf32>
    %cst_119 = arith.constant 1.000000e+00 : f32
    %490 = vector.broadcast %cst_119 : f32 to vector<2x32xf32>
    %491 = arith.addf %490, %489 : vector<2x32xf32>
    %492 = arith.divf %490, %491 : vector<2x32xf32>
    %493 = arith.mulf %484, %431 : vector<2x32xf32>
    %494 = arith.mulf %478, %486 : vector<2x32xf32>
    %495 = arith.addf %493, %494 : vector<2x32xf32>
    %496 = math.tanh %495 : vector<2x32xf32>
    %497 = arith.mulf %492, %496 : vector<2x32xf32>
    %498 = vector.shape_cast %497 : vector<2x32xf32> to vector<2x1x32xf32>
    "tpu.trace_start"() <{level = 10 : i32, message = "bqh,bph->bqp"}> : () -> ()
    %cst_120 = arith.constant dense<0.000000e+00> : vector<2x1x8xf32>
    %499 = tpu.matmul %498, %6, %cst_120 {dimension_numbers = #tpu.dot_dimension_numbers<[2], [2], [1], [1], [0, 0, 0, 1, 1, 1], [0], [0]>} : vector<2x1x32xf32>, vector<2x8x32xf32>, vector<2x1x8xf32> -> vector<2x1x8xf32>
    "tpu.trace_stop"() : () -> ()
    %500 = vector.shape_cast %499 : vector<2x1x8xf32> to vector<2x8xf32>
    %cst_121 = arith.constant 5.000000e-01 : f32
    %501 = vector.broadcast %cst_121 : f32 to vector<2x8xf32>
    %502 = arith.cmpf ogt, %468, %501 : vector<2x8xf32>
    %cst_122 = arith.constant -1.000000e+09 : f32
    %503 = vector.broadcast %cst_122 : f32 to vector<2x8xf32>
    %504 = arith.select %502, %503, %500 : vector<2x8xi1>, vector<2x8xf32>
    %cst_123 = arith.constant dense<0xFF800000> : vector<2xf32>
    %505 = vector.multi_reduction <maximumf>, %504, %cst_123 [1] : vector<2x8xf32> to vector<2xf32>
    %506 = vector.shape_cast %505 : vector<2xf32> to vector<2x1xf32>
    %507 = vector.broadcast %506 : vector<2x1xf32> to vector<2x8xf32>
    %508 = arith.subf %504, %507 : vector<2x8xf32>
    %509 = math.exp %508 : vector<2x8xf32>
    %cst_124 = arith.constant dense<0.000000e+00> : vector<2xf32>
    %510 = vector.multi_reduction <add>, %509, %cst_124 [1] : vector<2x8xf32> to vector<2xf32>
    %511 = vector.shape_cast %510 : vector<2xf32> to vector<2x1xf32>
    %512 = tpu.reciprocal %511 {approx = true} : vector<2x1xf32> -> vector<2x1xf32>
    %513 = vector.broadcast %512 : vector<2x1xf32> to vector<2x8xf32>
    %514 = arith.mulf %509, %513 : vector<2x8xf32>
    %515 = arith.index_cast %c7_i32 : i32 to index
    %c0_125 = arith.constant 0 : index
    %c0_126 = arith.constant 0 : index
    %516 = vector.load %arg8[%515, %c0_125, %c0_126] : memref<8x2x8xf32, #tpu.memory_space<vmem>>, vector<1x2x8xf32>
    %517 = vector.shape_cast %516 : vector<1x2x8xf32> to vector<2x8xf32>
    %518 = vector.shape_cast %514 : vector<2x8xf32> to vector<1x2x8xf32>
    tpu.vector_store %arg8[%515, %c0_125, %c0_126], %518 {strides = array<i32>} : memref<8x2x8xf32, #tpu.memory_space<vmem>>, vector<1x2x8xf32>,
    %519 = vector.broadcast %506 : vector<2x1xf32> to vector<2x8xf32>
    %520 = arith.cmpf oge, %504, %519 : vector<2x8xf32>
    %c8_i32_127 = arith.constant 8 : i32
    %521 = vector.broadcast %c8_i32_127 : i32 to vector<2x8xi32>
    %522 = arith.select %520, %7, %521 : vector<2x8xi1>, vector<2x8xi32>
    %cst_128 = arith.constant dense<2147483647> : vector<2xi32>
    %523 = vector.multi_reduction <minsi>, %522, %cst_128 [1] : vector<2x8xi32> to vector<2xi32>
    %524 = vector.shape_cast %523 : vector<2xi32> to vector<2x1xi32>
    %525 = vector.broadcast %524 : vector<2x1xi32> to vector<2x8xi32>
    %526 = arith.cmpi eq, %7, %525 : vector<2x8xi32>
    %527 = arith.extui %526 : vector<2x8xi1> to vector<2x8xi32>
    %528 = arith.sitofp %527 : vector<2x8xi32> to vector<2x8xf32>
    %529 = vector.shape_cast %528 : vector<2x8xf32> to vector<2x1x8xf32>
    "tpu.trace_start"() <{level = 10 : i32, message = "bqp,bpe->bqe"}> : () -> ()
    %cst_129 = arith.constant dense<0.000000e+00> : vector<2x1x32xf32>
    %530 = tpu.matmul %529, %0, %cst_129 {dimension_numbers = #tpu.dot_dimension_numbers<[2], [1], [1], [2], [0, 0, 0, 1, 1, 2], [0], [0]>} : vector<2x1x8xf32>, vector<2x8x32xf32>, vector<2x1x32xf32> -> vector<2x1x32xf32>
    "tpu.trace_stop"() : () -> ()
    %531 = vector.shape_cast %530 : vector<2x1x32xf32> to vector<2x32xf32>
    %532 = arith.maximumf %468, %528 : vector<2x8xf32>
    %c8_i32_130 = arith.constant 8 : i32
    return
  }
}

</mosaic_0001>

<bundles_post_ra>
// kernel: informed_pointer_forward.1
= control target key start
LH: loop header
LB: loop body
LE: loop exit
PB: predicated region body
PF: predicated region fallthrough
CT: control target
= control target key end

     0   :  { %13 = vsyncpa [#allocation3], 0  ;;  %s2653_s0 = inlined_call_operand.vmem [shape: f32[2,32], index: 0, kind: input, shape index: {}]   ;;  %s2654_s1 = inlined_call_operand.hbm [shape: f32[2,8,32], index: 1, kind: input, shape index: {}]   ;;  %s2655_s2 = inlined_call_operand.vmem [shape: s32[2,1], index: 2, kind: input, shape index: {}]   ;;  %s2656_s3 = inlined_call_operand.hbm [shape: f32[32,32], index: 3, kind: input, shape index: {}]   ;;  %s2657_s4 = inlined_call_operand.vmem [shape: f32[1,32], index: 4, kind: input, shape index: {}]   ;;  %s2658_s5 = inlined_call_operand.hbm [shape: f32[64,128], index: 5, kind: input, shape index: {}]   ;;  %s2659_s6 = inlined_call_operand.vmem [shape: f32[1,128], index: 6, kind: input, shape index: {}]   ;;  %s2660_s7 = inlined_call_operand.hbm [shape: f32[32,32], index: 7, kind: input, shape index: {}]   ;;  %s2661_s8 = inlined_call_operand.vmem [shape: f32[8,2,8], index: 8, kind: output, shape index: {}]  }
   0x1   :  { %14 = vsyncpa [#allocation5], 0 }
   0x2   :  { %15 = vsyncpa [#allocation8], 0  ;;  %s37_s29 = sshll.u32 %s2656_s3, 4  ;;  %s2092_s30 = smov [#allocation4]   ;;  %s38_s29 = int_to_ptr.hbm [resolvable:$true] %s37_s29 }
   0x3   :  { %s39_s9 = sshll.u32 %s2092_s30, 4  ;;  %s22_s12 = sshll.u32 %s2654_s1, 4  ;;  %s40_s9 = int_to_ptr.vmem [resolvable:$true] %s39_s9  ;;  %s23_s12 = int_to_ptr.hbm [resolvable:$true] %s22_s12 }
   0x4   :  { %s2093_s13 = smov 128   ;;  %s2094_s14 = smov 8  }
   0x5   :  { %45 = dma.hbm_to_vmem [thread:$0]  %s38_s29, 512, %s40_s9, [#allocation5], %s2093_s13, %s2093_s13, %s2094_s14  }
   0x6   :  { %s2095_s15 = smov [#allocation2]   ;;  %s52_s19 = sshll.u32 %s2658_s5, 4  ;;  %s53_s19 = int_to_ptr.hbm [resolvable:$true] %s52_s19 }
   0x7   :  { %s24_s16 = sshll.u32 %s2095_s15, 4  ;;  %s67_s21 = sshll.u32 %s2660_s7, 4  ;;  %s25_s16 = int_to_ptr.vmem [resolvable:$true] %s24_s16  ;;  %s68_s21 = int_to_ptr.hbm [resolvable:$true] %s67_s21 }
   0x8   :  { %30 = dma.hbm_to_vmem [thread:$0]  %s23_s12, 256, %s25_s16, [#allocation3], %s2093_s13, %s2093_s13, %s2094_s14  }
   0x9   :  { %s2096_s22 = smov [#allocation6]   ;;  %s2097_s1 = smov [#allocation7]  }
   0xa   :  { %s54_s23 = sshll.u32 %s2096_s22, 4  ;;  %s69_s24 = sshll.u32 %s2097_s1, 4  ;;  %s55_s23 = int_to_ptr.vmem [resolvable:$true] %s54_s23  ;;  %s70_s24 = int_to_ptr.vmem [resolvable:$true] %s69_s24 }
   0xb   :  { %60 = dma.hbm_to_vmem [thread:$0]  %s53_s19, 1024, %s55_s23, [#allocation5], %s2093_s13, %s2093_s13, %s2094_s14  }
   0xc   :  { %75 = dma.hbm_to_vmem [thread:$0]  %s68_s21, 512, %s70_s24, [#allocation8], %s2093_s13, %s2093_s13, %s2094_s14  }
   0xd   :  { %2086 = dma.done.wait [#allocation3], 256  }
   0xe   :  { %2087 = vsyncadd [#allocation3], 4294967040 }
   0xf   :  { %2088 = dma.done.wait [#allocation5], 1536  }
  0x10   :  { %2089 = vsyncadd [#allocation5], 4294965760 }
  0x11   :  { %2090 = dma.done.wait [#allocation8], 512  }
  0x12   :  { %2091 = vsyncadd [#allocation8], 4294966784  ;;  %v143_v0 = vld [vmem:[#allocation4 + $0x18] sm:$0xff]  ;;  %v142_v1 = vld [vmem:[#allocation4 + $0x10] sm:$0xff]  ;;  %vm107_vm0 = vcmask 261120   ;;  %s2098_s26 = smov 32   ;;  %v137_v58 = vlaneseq }
  0x13   :  { %163 = vmatpush.msra.mxu1 %v143_v0  ;;  %v141_v2 = vld [vmem:[#allocation4 + $0x8] sm:$0xff]  ;;  %v140_v3 = vld [vmem:[#allocation4] sm:$0xff]  ;;  %v139_v4 = vld [vmem:[%s2653_s0] sm:$0x3]  ;;  %vm186_vm1 = vcmask 523264   ;;  %v2100_v55 = vmov 0  }
  0x14   :  { %v2163_v5 = vld [vmem:[#allocation6 + $0x38] sm:$0xff]  ;;  %v2165_v6 = vld [vmem:[#allocation6 + $0x30] sm:$0xff]  ;;  %v2168_v7 = vld [vmem:[#allocation6 + $0x28] sm:$0xff]  ;;  %1880 = vset.pattern.permute.xlu0 %v2100_v55  ;;  %v2246_v59 = vand.u32 127, %v137_v58  ;;  %v2101_v62 = vmov 0.0   ;;  %vm309_vm7 = vcmask 1041409  }
  0x15   :  { %164 = vmatpush.msra.mxu1 %v142_v1  ;;  %198 = vmatpush.msra.mxu2 %v2163_v5  ;;  %v2171_v8 = vld [vmem:[#allocation6 + $0x20] sm:$0xff]  ;;  %v2174_v9 = vld [vmem:[#allocation6 + $0x18] sm:$0xff]  ;;  %v2177_v10 = vld [vmem:[#allocation6 + $0x10] sm:$0xff]  ;;  %vm313_vm9 = vcmask 58368   ;;  %vm348_vm12 = vcmask 64512  }
  0x16   :  { %v2180_v11 = vld [vmem:[#allocation6 + $0x8] sm:$0xff]  ;;  %v1881_v12 = vld [vmem:[%s2657_s4] ss:$0 sm:$0xff]  ;;  %v2188_v15 = vld [vmem:[#allocation6] sm:$0xff]  ;;  %s2099_s4 = smov 64  }
  0x17   :  { %165 = vmatpush.msra.mxu1 %v141_v2  ;;  %199 = vmatpush.msra.mxu2 %v2165_v6  ;;  %v2196_v18 = vld [vmem:[%s2659_s6] ss:$0 sm:$0xff]  ;;  %v106_v37 = vld [vmem:[#allocation7 + $0x18] sm:$0xff]  ;;  %v104_v40 = vld [vmem:[#allocation7 + $0x8] sm:$0xff] }
  0x18   :  { %v105_v38 = vld [vmem:[#allocation7 + $0x10] sm:$0xff]  ;;  %126 = vmatpush.msra.mxu0 %v106_v37  ;;  %v103_v41 = vld [vmem:[#allocation7] sm:$0xff]  ;;  %v2208_v42 = vld [vmem:[#allocation2 + $0x8] sm:$0xff] }
  0x19   :  { %166 = vmatpush.msra.mxu1 %v140_v3  ;;  %200 = vmatpush.msra.mxu2 %v2168_v7  ;;  %v2201_v39 = vld [vmem:[#allocation2] sm:$0xff] }
  0x1a   :  { %1792 = vmatmul.msk.f32.vlgmr.msra.gmra.mxu1 %vm107_vm0, %v139_v4  ;;  %127 = vmatpush.msra.mxu0 %v105_v38  ;;  %v171_v54 = vld [vmem:[%s2655_s2] sm:$0x3] }
  0x1b   :  { %201 = vmatpush.msra.mxu2 %v2171_v8  ;;  %366 = vmatpush.msrb.mxu1 %v2201_v39 }
  0x1c   :  { %128 = vmatpush.msra.mxu0 %v104_v40 }
  0x1d   :  { %202 = vmatpush.msra.mxu2 %v2174_v9 }
  0x1e   :  { %129 = vmatpush.msra.mxu0 %v103_v41 }
  0x1f   :  { %203 = vmatpush.msra.mxu2 %v2177_v10  ;;  %1790 = vmatmul.msk.f32.vlgmr.msra.gmra.mxu0 %vm107_vm0, %v2201_v39 }
  0x20   :  { %414 = vmatpush.msrb.mxu0 %v2163_v5 }
  0x21   :  { %204 = vmatpush.msra.mxu2 %v2180_v11 }
  0x22   :  { %415 = vmatpush.msrb.mxu0 %v2165_v6 }
  0x23   :  { %205 = vmatpush.msra.mxu2 %v2188_v15 }
  0x24   :  { %416 = vmatpush.msrb.mxu0 %v2168_v7 }
  0x26   :  { %417 = vmatpush.msrb.mxu0 %v2171_v8 }
  0x27   :  { %1791 = vmatmul.msk.f32.gmra.mxu0 %vm107_vm0, %v2208_v42 }
  0x28   :  { %418 = vmatpush.msrb.mxu0 %v2174_v9 }
  0x2a   :  { %419 = vmatpush.msrb.mxu0 %v2177_v10 }
  0x2c   :  { %420 = vmatpush.msrb.mxu0 %v2180_v11 }
  0x2e   :  { %421 = vmatpush.msrb.mxu0 %v2188_v15 }
  0x30   :  { %596 = vmatpush.msra.mxu0 %v2208_v42 }
  0x97   :  { %v168_v13 = vpop.f32.mrf.mxu1 }
  0x98   :  { %v169_v14 = vadd.f32 %v1881_v12, %v168_v13 }
  0x9a   :  { %179 = vrot.lane.b32.xlu0 %v169_v14, %s2098_s26 }
  0x9c   :  { %v2223_v47 = vpop.f32.mrf.mxu0 }
  0x9d   :  { %1796 = vmatpush.xpose.msk.msrb.mxu2 %vm107_vm0, %v2223_v47  ;;  %1805 = vmatpush.xpose.msk.msra.mxu1 %vm107_vm0, %v2223_v47 }
  0xa4   :  { %v2229_v48 = vpop.f32.mrf.mxu0 }
  0xa5   :  { %1798 = vmatpush.xpose.msk.msra.mxu3 %vm107_vm0, %v2229_v48 }
  0xa9   :  { %388 = vmatpush.msrb.mxu3 %v2208_v42 }
 0x10c   :  { %v180_v16 = vpop.permute.xlu0 %179 }
 0x10d   :  { %v182_v17 = vsel %vm107_vm0, 0.0, %v180_v16 }
 0x10e   :  { %1794 = vmatmul.msk.f32.vlgmr.msra.gmra.mxu2 %vm186_vm1, %v182_v17 }
 0x10f   :  { %1807 = vmatpush.xpose.msk.msra.mxu2 %vm107_vm0, %v2229_v48 }
 0x191   :  { %v207_v19 = vpop.f32.mrf.mxu2 }
 0x192   :  { %v208_v20 = vadd.f32 %v2196_v18, %v207_v19 }
 0x194   :  { %1883 = vtanh.f32 %v208_v20  ;;  %v1795_v22 = vmul.f32 -1.442695, %v208_v20 }
 0x196   :  { %1885 = vpow2.f32 %v1795_v22 }
 0x19a   :  { %v1884_v21 = vpop.eup %1883 }
 0x19b   :  { %232 = vrot.lane.b32.xlu0 %v1884_v21, %s2099_s4 }
 0x19c   :  { %v1886_v23 = vpop.eup %1885 }
 0x19d   :  { %v213_v24 = vadd.f32 1.0, %v1886_v23 }
 0x19f   :  { %1887 = vrcp.f32 %v213_v24  ;;  %v225_v30 = vand.u32 2147483648, %v213_v24  ;;  %vm219_vm3 = vweird.f32 %v213_v24  ;;  %v223_v31 = vand.u32 2147483647, %v213_v24 }
 0x1a1   :  { %v226_v33 = vor.u32 1.1754944e-38, %v225_v30  ;;  %vm224_vm5 = vcmp.eq.f32.partialorder %v223_v31, 8.507059e+37 }
 0x1a3   :  { %173 = vperm.xlu0 %1880, %v171_v54  }
 0x1a5   :  { %v1888_v25 = vpop.eup %1887 }
 0x1a6   :  { %v215_v26 = vmul.f32 %v1888_v25, %v213_v24  ;;  %vm220_vm2 = vweird.f32 %v1888_v25 }
 0x1a7   :  { %vm221_vm4 = vmor %vm219_vm3, %vm220_vm2 }
 0x1a8   :  { %v216_v27 = vsub.f32 1.0, %v215_v26 }
 0x1aa   :  { %v217_v28 = vmul.f32 %v1888_v25, %v216_v27 }
 0x1ac   :  { %v218_v29 = vadd.f32 %v1888_v25, %v217_v28 }
 0x1ae   :  { %v222_v32 = vsel %vm221_vm4, %v1888_v25, %v218_v29 }
 0x1af   :  { %v227_v35 = vsel %vm224_vm5, %v226_v33, %v222_v32 }
 0x1b0   :  { %v230_v43 = vmul.f32 0.0, %v227_v35 }
 0x20d   :  { %v233_v34 = vpop.permute.xlu0 %232 }
 0x20e   :  { %v235_v36 = vmul.f32 %v233_v34, %v227_v35 }
 0x210   :  { %237 = vrot.lane.b32.xlu1 %v235_v36, %s2098_s26 }
 0x215   :  { %v174_v60 = vpop.permute.xlu0 %173 }
 0x216   :  { %vm175_vm6 = vcmp.ge.s32.totalorder %v2246_v59, %v174_v60 }
 0x217   :  { %v2250_v63 = vsel %vm175_vm6, 1.0, %v2101_v62 }
 0x218   :  { %vm305_vm8 = vcmp.gt.f32.partialorder %v2250_v63, 0.5 }
 0x282   :  { %v238_v44 = vpop.permute.xlu1 %237 }
 0x283   :  { %v2217_v45 = vadd.f32 %v238_v44, %v230_v43 }
 0x285   :  { %1889 = vtanh.f32 %v2217_v45 }
 0x28b   :  { %v1890_v46 = vpop.eup %1889 }
 0x28c   :  { %243 = vrot.lane.b32.xlu1 %v1890_v46, %s2099_s4 }
 0x2fe   :  { %v244_v49 = vpop.permute.xlu1 %243 }
 0x2ff   :  { %v246_v50 = vmul.f32 %v244_v49, %v227_v35 }
 0x301   :  { %v248_v51 = vrot.slane %v246_v50, 1  ;;  %v249_v53 = vperm.slane %v246_v50, 0 }
 0x303   :  { %v277_v52 = vperm.slane %v248_v51, 0 }
 0x305   :  { %278 = vrot.lane.b32.xlu2 %v277_v52, %s2098_s26 }
 0x30d   :  { %250 = vrot.lane.b32.xlu2 %v249_v53, %s2098_s26 }
 0x35f   :  { %v279_v56 = vpop.permute.xlu2 %278 }
 0x360   :  { %1799 = vmatmul.msk.f32.vlgmr.msra.gmra.mxu3 %vm107_vm0, %v279_v56 }
 0x361   :  { %574 = vmatpush.msra.mxu3 %v2201_v39 }
 0x367   :  { %v251_v57 = vpop.permute.xlu2 %250 }
 0x368   :  { %1797 = vmatmul.msk.f32.vlgmr.msrb.gmra.mxu2 %vm107_vm0, %v251_v57 }
 0x369   :  { %1815 = vmatpush.xpose.msk.msrb.mxu2 %vm107_vm0, %v2223_v47 }
 0x3e3   :  { %v302_v61 = vpop.f32.mrf.mxu3 }
 0x3e4   :  { %v308_v0 = vrot.slane %v302_v61, 7 }
 0x3eb   :  { %v274_v1 = vpop.f32.mrf.mxu2 }
 0x3ec   :  { %v310_v2 = vsel %vm309_vm7, %v308_v0, %v274_v1 }
 0x3ed   :  { %v2254_v3 = vsel %vm305_vm8, -1e+09, %v310_v2 }
 0x3ee   :  { %v314_v4 = vsel %vm313_vm9, %v2254_v3, -inf }
 0x3ef   :  { %315 = vmax.xlane.f32.xlu1 %v314_v4 }
 0x462   :  { %v2258_v12 = vpop.xlane.xlu1 %315 }
 0x463   :  { %vm326_vm10 = vcmp.ge.f32.partialorder %v2254_v3, %v2258_v12 }
 0x464   :  { %v327_v13 = vsel %vm326_vm10, %v2246_v59, 8 }
 0x465   :  { %v328_v14 = vsel %vm313_vm9, %v327_v13, 2147483647 }
 0x466   :  { %v330_v16 = vshra.s32 %v328_v14, 16  ;;  %v329_v19 = vand.u32 65535, %v328_v14 }
 0x468   :  { %v332_v17 = vcvt.s32.f32 %v330_v16  ;;  %v331_v21 = vcvt.s32.f32 %v329_v19 }
 0x46a   :  { %333 = vmin.xlane.f32.xlu2 %v332_v17 }
 0x482   :  { %399 = vrot.lane.b32.xlu2 %v246_v50, %s2099_s4 }
 0x4dd   :  { %v334_v20 = vpop.xlane.xlu2 %333 }
 0x4de   :  { %vm335_vm11 = vcmp.eq.f32.partialorder %v332_v17, %v334_v20  ;;  %v340_v23 = vcvt.f32.s32 %v334_v20 }
 0x4df   :  { %v336_v22 = vsel %vm335_vm11, %v331_v21, inf }
 0x4e0   :  { %337 = vmin.xlane.f32.xlu0 %v336_v22  ;;  %v341_v25 = vshll.u32 %v340_v23, 16 }
 0x4e5   :  { %v400_v33 = vpop.permute.xlu2 %399 }
 0x553   :  { %v338_v24 = vpop.xlane.xlu0 %337 }
 0x554   :  { %v339_v26 = vcvt.f32.s32 %v338_v24 }
 0x556   :  { %v342_v27 = vadd.s32 %v341_v25, %v339_v26 }
 0x558   :  { %vm343_vm13 = vcmp.eq.s32.totalorder %v2246_v59, %v342_v27 }
 0x559   :  { %v2267_v28 = vsel %vm343_vm13, 1.0, %v2101_v62 }
 0x55a   :  { %v347_v29 = vrot.slane %v2267_v28, 1  ;;  %1801 = vmatmul.msk.f32.vlgmr.msrb.gmra.mxu1 %vm348_vm12, %v2267_v28  ;;  %v2304_v19 = vmax.f32 %v2250_v63, %v2267_v28 }
 0x55b   :  { %622 = vmatpush.msrb.mxu1 %v2163_v5 }
 0x55c   :  { %1802 = vmatmul.msk.f32.vlgmr.msrb.gmra.mxu3 %vm348_vm12, %v347_v29  ;;  %vm515_vm4 = vcmp.gt.f32.partialorder %v2304_v19, 0.5 }
 0x55d   :  { %1817 = vmatpush.xpose.msk.msrb.mxu3 %vm107_vm0, %v2229_v48  ;;  %623 = vmatpush.msrb.mxu1 %v2165_v6 }
 0x55f   :  { %624 = vmatpush.msrb.mxu1 %v2168_v7 }
 0x561   :  { %625 = vmatpush.msrb.mxu1 %v2171_v8 }
 0x563   :  { %626 = vmatpush.msrb.mxu1 %v2174_v9 }
 0x565   :  { %627 = vmatpush.msrb.mxu1 %v2177_v10 }
 0x567   :  { %628 = vmatpush.msrb.mxu1 %v2180_v11 }
 0x569   :  { %629 = vmatpush.msrb.mxu1 %v2188_v15 }
 0x5d7   :  { %v368_v32 = vpop.f32.mrf.mxu1 }
 0x5df   :  { %v390_v30 = vpop.f32.mrf.mxu3 }
 0x5e0   :  { %v396_v31 = vrot.slane %v390_v30, 7 }
 0x5e2   :  { %v397_v34 = vsel %vm309_vm7, %v396_v31, %v368_v32 }
 0x5e3   :  { %v402_v35 = vsel %vm107_vm0, %v397_v34, %v400_v33 }
 0x5e4   :  { %1803 = vmatmul.msk.f32.vlgmr.msrb.gmra.mxu0 %vm186_vm1, %v402_v35 }
 0x5e5   :  { %782 = vmatpush.msrb.mxu0 %v2201_v39 }
 0x661   :  { %v423_v36 = vpop.f32.mrf.mxu0 }
 0x662   :  { %v424_v37 = vadd.f32 %v2196_v18, %v423_v36 }
 0x664   :  { %1891 = vtanh.f32 %v424_v37  ;;  %v1804_v40 = vmul.f32 -1.442695, %v424_v37 }
 0x666   :  { %1893 = vpow2.f32 %v1804_v40 }
 0x66a   :  { %v1892_v38 = vpop.eup %1891 }
 0x66b   :  { %448 = vrot.lane.b32.xlu1 %v1892_v38, %s2099_s4 }
 0x66c   :  { %v1894_v41 = vpop.eup %1893 }
 0x66d   :  { %v429_v43 = vadd.f32 1.0, %v1894_v41 }
 0x66f   :  { %1895 = vrcp.f32 %v429_v43  ;;  %v441_v52 = vand.u32 2147483648, %v429_v43  ;;  %vm435_vm15 = vweird.f32 %v429_v43  ;;  %v439_v53 = vand.u32 2147483647, %v429_v43 }
 0x671   :  { %v442_v55 = vor.u32 1.1754944e-38, %v441_v52  ;;  %vm440_vm3 = vcmp.eq.f32.partialorder %v439_v53, 8.507059e+37 }
 0x675   :  { %v1896_v44 = vpop.eup %1895 }
 0x676   :  { %v431_v46 = vmul.f32 %v1896_v44, %v429_v43  ;;  %vm436_vm14 = vweird.f32 %v1896_v44 }
 0x677   :  { %vm437_vm2 = vmor %vm435_vm15, %vm436_vm14 }
 0x678   :  { %v432_v49 = vsub.f32 1.0, %v431_v46 }
 0x67a   :  { %v433_v50 = vmul.f32 %v1896_v44, %v432_v49 }
 0x67c   :  { %v434_v51 = vadd.f32 %v1896_v44, %v433_v50 }
 0x67e   :  { %v438_v54 = vsel %vm437_vm2, %v1896_v44, %v434_v51 }
 0x67f   :  { %v443_v57 = vsel %vm440_vm3, %v442_v55, %v438_v54 }
 0x680   :  { %v446_v60 = vmul.f32 %v443_v57, %v2217_v45 }
 0x6dd   :  { %v449_v56 = vpop.permute.xlu1 %448 }
 0x6de   :  { %v451_v58 = vmul.f32 %v449_v56, %v443_v57 }
 0x6e0   :  { %453 = vrot.lane.b32.xlu0 %v451_v58, %s2098_s26 }
 0x752   :  { %v454_v61 = vpop.permute.xlu0 %453 }
 0x753   :  { %v2291_v0 = vadd.f32 %v454_v61, %v446_v60 }
 0x755   :  { %1897 = vtanh.f32 %v2291_v0 }
 0x75b   :  { %v1898_v1 = vpop.eup %1897 }
 0x75c   :  { %459 = vrot.lane.b32.xlu2 %v1898_v1, %s2099_s4 }
 0x7b6   :  { %v460_v2 = vpop.permute.xlu2 %459 }
 0x7b7   :  { %v462_v4 = vmul.f32 %v460_v2, %v443_v57 }
 0x7b9   :  { %v465_v13 = vperm.slane %v462_v4, 0  ;;  %v464_v14 = vrot.slane %v462_v4, 1 }
 0x7bb   :  { %466 = vrot.lane.b32.xlu2 %v465_v13, %s2098_s26  ;;  %v490_v16 = vperm.slane %v464_v14, 0 }
 0x7bd   :  { %491 = vrot.lane.b32.xlu1 %v490_v16, %s2098_s26 }
 0x815   :  { %v467_v17 = vpop.permute.xlu2 %466 }
 0x816   :  { %1806 = vmatmul.msk.f32.vlgmr.msra.gmra.mxu1 %vm107_vm0, %v467_v17 }
 0x817   :  { %1827 = vmatpush.xpose.msk.msra.mxu1 %vm107_vm0, %v2229_v48 }
 0x82f   :  { %v492_v45 = vpop.permute.xlu1 %491 }
 0x830   :  { %1808 = vmatmul.msk.f32.vlgmr.msra.gmra.mxu2 %vm107_vm0, %v492_v45 }
 0x831   :  { %804 = vmatpush.msra.mxu2 %v2208_v42 }
 0x893   :  { %v487_v22 = vpop.f32.mrf.mxu1 }
 0x8b3   :  { %v512_v20 = vpop.f32.mrf.mxu2 }
 0x8b4   :  { %v518_v21 = vrot.slane %v512_v20, 7 }
 0x8b6   :  { %v519_v23 = vsel %vm309_vm7, %v518_v21, %v487_v22 }
 0x8b7   :  { %v2308_v24 = vsel %vm515_vm4, -1e+09, %v519_v23 }
 0x8b8   :  { %v522_v25 = vsel %vm313_vm9, %v2308_v24, -inf }
 0x8b9   :  { %523 = vmax.xlane.f32.xlu1 %v522_v25 }
 0x8d2   :  { %607 = vrot.lane.b32.xlu1 %v462_v4, %s2099_s4 }
 0x92c   :  { %v2313_v26 = vpop.xlane.xlu1 %523 }
 0x92d   :  { %vm535_vm5 = vcmp.ge.f32.partialorder %v2308_v24, %v2313_v26 }
 0x92e   :  { %v536_v63 = vsel %vm535_vm5, %v2246_v59, 8 }
 0x92f   :  { %v537_v27 = vsel %vm313_vm9, %v536_v63, 2147483647 }
 0x930   :  { %v539_v28 = vshra.s32 %v537_v27, 16  ;;  %v538_v30 = vand.u32 65535, %v537_v27 }
 0x932   :  { %v541_v29 = vcvt.s32.f32 %v539_v28  ;;  %v540_v32 = vcvt.s32.f32 %v538_v30 }
 0x934   :  { %542 = vmin.xlane.f32.xlu0 %v541_v29 }
 0x944   :  { %v608_v49 = vpop.permute.xlu1 %607 }
 0x9a7   :  { %v543_v31 = vpop.xlane.xlu0 %542 }
 0x9a8   :  { %vm544_vm6 = vcmp.eq.f32.partialorder %v541_v29, %v543_v31  ;;  %v549_v34 = vcvt.f32.s32 %v543_v31 }
 0x9a9   :  { %v545_v33 = vsel %vm544_vm6, %v540_v32, inf }
 0x9aa   :  { %546 = vmin.xlane.f32.xlu2 %v545_v33  ;;  %v550_v36 = vshll.u32 %v549_v34, 16 }
 0xa1d   :  { %v547_v35 = vpop.xlane.xlu2 %546 }
 0xa1e   :  { %v548_v37 = vcvt.f32.s32 %v547_v35 }
 0xa20   :  { %v551_v38 = vadd.s32 %v550_v36, %v548_v37 }
 0xa22   :  { %vm552_vm8 = vcmp.eq.s32.totalorder %v2246_v59, %v551_v38 }
 0xa23   :  { %v2321_v40 = vsel %vm552_vm8, 1.0, %v2101_v62 }
 0xa24   :  { %v556_v41 = vrot.slane %v2321_v40, 1  ;;  %1811 = vmatmul.msk.f32.vlgmr.msra.gmra.mxu3 %vm348_vm12, %v2321_v40  ;;  %v2365_v32 = vmax.f32 %v2304_v19, %v2321_v40 }
 0xa25   :  { %830 = vmatpush.msra.mxu3 %v2163_v5 }
 0xa26   :  { %1812 = vmatmul.msk.f32.vlgmr.msra.gmra.mxu0 %vm348_vm12, %v556_v41  ;;  %vm723_vm15 = vcmp.gt.f32.partialorder %v2365_v32, 0.5 }
 0xa27   :  { %1825 = vmatpush.xpose.msk.msra.mxu0 %vm107_vm0, %v2223_v47  ;;  %831 = vmatpush.msra.mxu3 %v2165_v6 }
 0xa29   :  { %832 = vmatpush.msra.mxu3 %v2168_v7 }
 0xa2b   :  { %833 = vmatpush.msra.mxu3 %v2171_v8 }
 0xa2d   :  { %834 = vmatpush.msra.mxu3 %v2174_v9 }
 0xa2f   :  { %835 = vmatpush.msra.mxu3 %v2177_v10 }
 0xa31   :  { %836 = vmatpush.msra.mxu3 %v2180_v11 }
 0xa33   :  { %837 = vmatpush.msra.mxu3 %v2188_v15 }
 0xaa3   :  { %v598_v43 = vpop.f32.mrf.mxu0 }
 0xaa4   :  { %v604_v44 = vrot.slane %v598_v43, 7 }
 0xaa7   :  { %v576_v46 = vpop.f32.mrf.mxu3 }
 0xaa8   :  { %v605_v50 = vsel %vm309_vm7, %v604_v44, %v576_v46 }
 0xaa9   :  { %v610_v51 = vsel %vm107_vm0, %v605_v50, %v608_v49 }
 0xaaa   :  { %1813 = vmatmul.msk.f32.vlgmr.msrb.gmra.mxu1 %vm186_vm1, %v610_v51 }
 0xaab   :  { %1038 = vmatpush.msrb.mxu1 %v2163_v5 }
 0xaad   :  { %1039 = vmatpush.msrb.mxu1 %v2165_v6 }
 0xaaf   :  { %1040 = vmatpush.msrb.mxu1 %v2168_v7 }
 0xab1   :  { %1041 = vmatpush.msrb.mxu1 %v2171_v8 }
 0xab3   :  { %1042 = vmatpush.msrb.mxu1 %v2174_v9 }
 0xab5   :  { %1043 = vmatpush.msrb.mxu1 %v2177_v10 }
 0xab7   :  { %1044 = vmatpush.msrb.mxu1 %v2180_v11 }
 0xab9   :  { %1045 = vmatpush.msrb.mxu1 %v2188_v15 }
 0xb27   :  { %v631_v52 = vpop.f32.mrf.mxu1 }
 0xb28   :  { %v632_v53 = vadd.f32 %v2196_v18, %v631_v52 }
 0xb2a   :  { %1899 = vtanh.f32 %v632_v53  ;;  %v1814_v55 = vmul.f32 -1.442695, %v632_v53 }
 0xb2c   :  { %1901 = vpow2.f32 %v1814_v55 }
 0xb30   :  { %v1900_v54 = vpop.eup %1899 }
 0xb31   :  { %656 = vrot.lane.b32.xlu0 %v1900_v54, %s2099_s4 }
 0xb32   :  { %v1902_v56 = vpop.eup %1901 }
 0xb33   :  { %v637_v57 = vadd.f32 1.0, %v1902_v56 }
 0xb35   :  { %1903 = vrcp.f32 %v637_v57  ;;  %v649_v4 = vand.u32 2147483648, %v637_v57  ;;  %vm643_vm11 = vweird.f32 %v637_v57  ;;  %v647_v13 = vand.u32 2147483647, %v637_v57 }
 0xb37   :  { %v650_v16 = vor.u32 1.1754944e-38, %v649_v4  ;;  %vm648_vm14 = vcmp.eq.f32.partialorder %v647_v13, 8.507059e+37 }
 0xb3b   :  { %v1904_v58 = vpop.eup %1903 }
 0xb3c   :  { %v639_v60 = vmul.f32 %v1904_v58, %v637_v57  ;;  %vm644_vm10 = vweird.f32 %v1904_v58 }
 0xb3d   :  { %vm645_vm13 = vmor %vm643_vm11, %vm644_vm10 }
 0xb3e   :  { %v640_v61 = vsub.f32 1.0, %v639_v60 }
 0xb40   :  { %v641_v1 = vmul.f32 %v1904_v58, %v640_v61 }
 0xb42   :  { %v642_v2 = vadd.f32 %v1904_v58, %v641_v1 }
 0xb44   :  { %v646_v14 = vsel %vm645_vm13, %v1904_v58, %v642_v2 }
 0xb45   :  { %v651_v45 = vsel %vm648_vm14, %v650_v16, %v646_v14 }
 0xb46   :  { %v654_v21 = vmul.f32 %v651_v45, %v2291_v0 }
 0xba3   :  { %v657_v17 = vpop.permute.xlu0 %656 }
 0xba4   :  { %v659_v20 = vmul.f32 %v657_v17, %v651_v45 }
 0xba6   :  { %661 = vrot.lane.b32.xlu2 %v659_v20, %s2098_s26 }
 0xc00   :  { %v662_v22 = vpop.permute.xlu2 %661 }
 0xc01   :  { %v2352_v23 = vadd.f32 %v662_v22, %v654_v21 }
 0xc03   :  { %1905 = vtanh.f32 %v2352_v23 }
 0xc09   :  { %v1906_v25 = vpop.eup %1905 }
 0xc0a   :  { %667 = vrot.lane.b32.xlu0 %v1906_v25, %s2099_s4 }
 0xc7c   :  { %v668_v63 = vpop.permute.xlu0 %667 }
 0xc7d   :  { %v670_v27 = vmul.f32 %v668_v63, %v651_v45 }
 0xc7f   :  { %v673_v28 = vperm.slane %v670_v27, 0  ;;  %v672_v29 = vrot.slane %v670_v27, 1 }
 0xc81   :  { %674 = vrot.lane.b32.xlu2 %v673_v28, %s2098_s26  ;;  %v698_v30 = vperm.slane %v672_v29, 0 }
 0xc83   :  { %699 = vrot.lane.b32.xlu1 %v698_v30, %s2098_s26 }
 0xcdb   :  { %v675_v31 = vpop.permute.xlu2 %674 }
 0xcdc   :  { %1816 = vmatmul.msk.f32.vlgmr.msrb.gmra.mxu2 %vm107_vm0, %v675_v31 }
 0xcdd   :  { %990 = vmatpush.msrb.mxu2 %v2201_v39 }
 0xcf5   :  { %v700_v0 = vpop.permute.xlu1 %699 }
 0xcf6   :  { %1818 = vmatmul.msk.f32.vlgmr.msrb.gmra.mxu3 %vm107_vm0, %v700_v0 }
 0xcf7   :  { %1837 = vmatpush.xpose.msk.msrb.mxu3 %vm107_vm0, %v2229_v48 }
 0xd5f   :  { %v695_v35 = vpop.f32.mrf.mxu2 }
 0xd79   :  { %v720_v33 = vpop.f32.mrf.mxu3 }
 0xd7a   :  { %v726_v34 = vrot.slane %v720_v33, 7 }
 0xd7c   :  { %v727_v36 = vsel %vm309_vm7, %v726_v34, %v695_v35 }
 0xd7d   :  { %v2369_v37 = vsel %vm723_vm15, -1e+09, %v727_v36 }
 0xd7e   :  { %v730_v38 = vsel %vm313_vm9, %v2369_v37, -inf }
 0xd7f   :  { %731 = vmax.xlane.f32.xlu0 %v730_v38 }
 0xd93   :  { %815 = vrot.lane.b32.xlu0 %v670_v27, %s2099_s4 }
 0xdf2   :  { %v2374_v41 = vpop.xlane.xlu0 %731 }
 0xdf3   :  { %vm743_vm2 = vcmp.ge.f32.partialorder %v2369_v37, %v2374_v41 }
 0xdf4   :  { %v744_v19 = vsel %vm743_vm2, %v2246_v59, 8 }
 0xdf5   :  { %v745_v40 = vsel %vm313_vm9, %v744_v19, 2147483647 }
 0xdf6   :  { %v747_v43 = vshra.s32 %v745_v40, 16  ;;  %v746_v46 = vand.u32 65535, %v745_v40 }
 0xdf8   :  { %v749_v44 = vcvt.s32.f32 %v747_v43  ;;  %v748_v50 = vcvt.s32.f32 %v746_v46 }
 0xdfa   :  { %750 = vmin.xlane.f32.xlu1 %v749_v44 }
 0xe05   :  { %v816_v2 = vpop.permute.xlu0 %815 }
 0xe6d   :  { %v751_v49 = vpop.xlane.xlu1 %750 }
 0xe6e   :  { %vm752_vm3 = vcmp.eq.f32.partialorder %v749_v44, %v751_v49  ;;  %v757_v52 = vcvt.f32.s32 %v751_v49 }
 0xe6f   :  { %v753_v51 = vsel %vm752_vm3, %v748_v50, inf }
 0xe70   :  { %754 = vmin.xlane.f32.xlu2 %v753_v51  ;;  %v758_v54 = vshll.u32 %v757_v52, 16 }
 0xee3   :  { %v755_v53 = vpop.xlane.xlu2 %754 }
 0xee4   :  { %v756_v55 = vcvt.f32.s32 %v755_v53 }
 0xee6   :  { %v759_v56 = vadd.s32 %v758_v54, %v756_v55 }
 0xee8   :  { %vm760_vm4 = vcmp.eq.s32.totalorder %v2246_v59, %v759_v56 }
 0xee9   :  { %v2382_v57 = vsel %vm760_vm4, 1.0, %v2101_v62 }
 0xeea   :  { %v764_v58 = vrot.slane %v2382_v57, 1  ;;  %1821 = vmatmul.msk.f32.vlgmr.msrb.gmra.mxu0 %vm348_vm12, %v2382_v57  ;;  %v2419_v52 = vmax.f32 %v2365_v32, %v2382_v57 }
 0xeeb   :  { %1012 = vmatpush.msrb.mxu0 %v2208_v42 }
 0xeec   :  { %1822 = vmatmul.msk.f32.vlgmr.msra.gmra.mxu2 %vm348_vm12, %v764_v58  ;;  %vm931_vm11 = vcmp.gt.f32.partialorder %v2419_v52, 0.5 }
 0xeed   :  { %1835 = vmatpush.xpose.msk.msra.mxu2 %vm107_vm0, %v2223_v47 }
 0xf67   :  { %v784_v1 = vpop.f32.mrf.mxu0 }
 0xf6f   :  { %v806_v60 = vpop.f32.mrf.mxu2 }
 0xf70   :  { %v812_v61 = vrot.slane %v806_v60, 7 }
 0xf72   :  { %v813_v4 = vsel %vm309_vm7, %v812_v61, %v784_v1 }
 0xf73   :  { %v818_v13 = vsel %vm107_vm0, %v813_v4, %v816_v2 }
 0xf74   :  { %1823 = vmatmul.msk.f32.vlgmr.msra.gmra.mxu3 %vm186_vm1, %v818_v13 }
 0xf75   :  { %1246 = vmatpush.msra.mxu3 %v2163_v5 }
 0xf77   :  { %1247 = vmatpush.msra.mxu3 %v2165_v6 }
 0xf79   :  { %1248 = vmatpush.msra.mxu3 %v2168_v7 }
 0xf7b   :  { %1249 = vmatpush.msra.mxu3 %v2171_v8 }
 0xf7d   :  { %1250 = vmatpush.msra.mxu3 %v2174_v9 }
 0xf7f   :  { %1251 = vmatpush.msra.mxu3 %v2177_v10 }
 0xf81   :  { %1252 = vmatpush.msra.mxu3 %v2180_v11 }
 0xf83   :  { %1253 = vmatpush.msra.mxu3 %v2188_v15 }
 0xff7   :  { %v839_v14 = vpop.f32.mrf.mxu3 }
 0xff8   :  { %v840_v16 = vadd.f32 %v2196_v18, %v839_v14 }
 0xffa   :  { %1907 = vtanh.f32 %v840_v16  ;;  %v1824_v45 = vmul.f32 -1.442695, %v840_v16 }
 0xffc   :  { %1909 = vpow2.f32 %v1824_v45 }
0x1000   :  { %v1908_v17 = vpop.eup %1907 }
0x1001   :  { %864 = vrot.lane.b32.xlu1 %v1908_v17, %s2099_s4 }
0x1002   :  { %v1910_v20 = vpop.eup %1909 }
0x1003   :  { %v845_v21 = vadd.f32 1.0, %v1910_v20 }
0x1005   :  { %1911 = vrcp.f32 %v845_v21  ;;  %v857_v29 = vand.u32 2147483648, %v845_v21  ;;  %vm851_vm6 = vweird.f32 %v845_v21  ;;  %v855_v30 = vand.u32 2147483647, %v845_v21 }
0x1007   :  { %v858_v0 = vor.u32 1.1754944e-38, %v857_v29  ;;  %vm856_vm10 = vcmp.eq.f32.partialorder %v855_v30, 8.507059e+37 }
0x100b   :  { %v1912_v22 = vpop.eup %1911 }
0x100c   :  { %v847_v25 = vmul.f32 %v1912_v22, %v845_v21  ;;  %vm852_vm5 = vweird.f32 %v1912_v22 }
0x100d   :  { %vm853_vm8 = vmor %vm851_vm6, %vm852_vm5 }
0x100e   :  { %v848_v63 = vsub.f32 1.0, %v847_v25 }
0x1010   :  { %v849_v27 = vmul.f32 %v1912_v22, %v848_v63 }
0x1012   :  { %v850_v28 = vadd.f32 %v1912_v22, %v849_v27 }
0x1014   :  { %v854_v31 = vsel %vm853_vm8, %v1912_v22, %v850_v28 }
0x1015   :  { %v859_v34 = vsel %vm856_vm10, %v858_v0, %v854_v31 }
0x1016   :  { %v862_v36 = vmul.f32 %v859_v34, %v2352_v23 }
0x1073   :  { %v865_v33 = vpop.permute.xlu1 %864 }
0x1074   :  { %v867_v35 = vmul.f32 %v865_v33, %v859_v34 }
0x1076   :  { %869 = vrot.lane.b32.xlu2 %v867_v35, %s2098_s26 }
0x10d0   :  { %v870_v38 = vpop.permute.xlu2 %869 }
0x10d1   :  { %v2406_v19 = vadd.f32 %v870_v38, %v862_v36 }
0x10d3   :  { %1913 = vtanh.f32 %v2406_v19 }
0x10d9   :  { %v1914_v40 = vpop.eup %1913 }
0x10da   :  { %875 = vrot.lane.b32.xlu0 %v1914_v40, %s2099_s4 }
0x114c   :  { %v876_v43 = vpop.permute.xlu0 %875 }
0x114d   :  { %v878_v44 = vmul.f32 %v876_v43, %v859_v34 }
0x114f   :  { %v881_v46 = vperm.slane %v878_v44, 0  ;;  %v880_v49 = vrot.slane %v878_v44, 1 }
0x1151   :  { %882 = vrot.lane.b32.xlu0 %v881_v46, %s2098_s26  ;;  %v906_v50 = vperm.slane %v880_v49, 0 }
0x1153   :  { %907 = vrot.lane.b32.xlu1 %v906_v50, %s2098_s26 }
0x11c3   :  { %v883_v51 = vpop.permute.xlu0 %882 }
0x11c4   :  { %1826 = vmatmul.msk.f32.vlgmr.msra.gmra.mxu0 %vm107_vm0, %v883_v51 }
0x11c5   :  { %v908_v23 = vpop.permute.xlu1 %907  ;;  %1198 = vmatpush.msra.mxu0 %v2201_v39 }
0x11c6   :  { %1828 = vmatmul.msk.f32.vlgmr.msra.gmra.mxu1 %vm107_vm0, %v908_v23 }
0x11c7   :  { %1847 = vmatpush.xpose.msk.msra.mxu1 %vm107_vm0, %v2229_v48 }
0x1241   :  { %v903_v55 = vpop.f32.mrf.mxu0 }
0x1243   :  { %v928_v53 = vpop.f32.mrf.mxu1 }
0x1244   :  { %v934_v54 = vrot.slane %v928_v53, 7 }
0x1246   :  { %v935_v56 = vsel %vm309_vm7, %v934_v54, %v903_v55 }
0x1247   :  { %v2423_v58 = vsel %vm931_vm11, -1e+09, %v935_v56 }
0x1248   :  { %v938_v60 = vsel %vm313_vm9, %v2423_v58, -inf }
0x1249   :  { %939 = vmax.xlane.f32.xlu2 %v938_v60 }
0x1261   :  { %1023 = vrot.lane.b32.xlu2 %v878_v44, %s2099_s4 }
0x12bc   :  { %v2428_v61 = vpop.xlane.xlu2 %939 }
0x12bd   :  { %vm951_vm13 = vcmp.ge.f32.partialorder %v2423_v58, %v2428_v61 }
0x12be   :  { %v952_v32 = vsel %vm951_vm13, %v2246_v59, 8 }
0x12bf   :  { %v953_v57 = vsel %vm313_vm9, %v952_v32, 2147483647 }
0x12c0   :  { %v955_v1 = vshra.s32 %v953_v57, 16  ;;  %v954_v4 = vand.u32 65535, %v953_v57 }
0x12c2   :  { %v957_v2 = vcvt.s32.f32 %v955_v1  ;;  %v956_v14 = vcvt.s32.f32 %v954_v4 }
0x12c4   :  { %958 = vmin.xlane.f32.xlu1 %v957_v2  ;;  %v1024_v30 = vpop.permute.xlu2 %1023 }
0x1337   :  { %v959_v13 = vpop.xlane.xlu1 %958 }
0x1338   :  { %vm960_vm14 = vcmp.eq.f32.partialorder %v957_v2, %v959_v13  ;;  %v965_v17 = vcvt.f32.s32 %v959_v13 }
0x1339   :  { %v961_v16 = vsel %vm960_vm14, %v956_v14, inf }
0x133a   :  { %962 = vmin.xlane.f32.xlu0 %v961_v16  ;;  %v966_v20 = vshll.u32 %v965_v17, 16 }
0x13ad   :  { %v963_v45 = vpop.xlane.xlu0 %962 }
0x13ae   :  { %v964_v21 = vcvt.f32.s32 %v963_v45 }
0x13b0   :  { %v967_v22 = vadd.s32 %v966_v20, %v964_v21 }
0x13b2   :  { %vm968_vm15 = vcmp.eq.s32.totalorder %v2246_v59, %v967_v22 }
0x13b3   :  { %v2436_v25 = vsel %vm968_vm15, 1.0, %v2101_v62 }
0x13b4   :  { %v972_v63 = vrot.slane %v2436_v25, 1  ;;  %1831 = vmatmul.msk.f32.vlgmr.msrb.gmra.mxu2 %vm348_vm12, %v2436_v25  ;;  %v2473_v57 = vmax.f32 %v2419_v52, %v2436_v25 }
0x13b5   :  { %1220 = vmatpush.msrb.mxu2 %v2208_v42 }
0x13b6   :  { %1832 = vmatmul.msk.f32.vlgmr.msrb.gmra.mxu0 %vm348_vm12, %v972_v63  ;;  %vm1139_vm6 = vcmp.gt.f32.partialorder %v2473_v57, 0.5 }
0x13b7   :  { %1845 = vmatpush.xpose.msk.msrb.mxu0 %vm107_vm0, %v2223_v47 }
0x1433   :  { %v1014_v27 = vpop.f32.mrf.mxu0 }
0x1434   :  { %v1020_v28 = vrot.slane %v1014_v27, 7 }
0x1437   :  { %v992_v29 = vpop.f32.mrf.mxu2 }
0x1438   :  { %v1021_v31 = vsel %vm309_vm7, %v1020_v28, %v992_v29 }
0x1439   :  { %v1026_v0 = vsel %vm107_vm0, %v1021_v31, %v1024_v30 }
0x143a   :  { %1833 = vmatmul.msk.f32.vlgmr.msrb.gmra.mxu1 %vm186_vm1, %v1026_v0 }
0x143b   :  { %1454 = vmatpush.msrb.mxu1 %v2163_v5 }
0x143d   :  { %1455 = vmatpush.msrb.mxu1 %v2165_v6 }
0x143f   :  { %1456 = vmatpush.msrb.mxu1 %v2168_v7 }
0x1441   :  { %1457 = vmatpush.msrb.mxu1 %v2171_v8 }
0x1443   :  { %1458 = vmatpush.msrb.mxu1 %v2174_v9 }
0x1445   :  { %1459 = vmatpush.msrb.mxu1 %v2177_v10 }
0x1447   :  { %1460 = vmatpush.msrb.mxu1 %v2180_v11 }
0x1449   :  { %1461 = vmatpush.msrb.mxu1 %v2188_v15 }
0x14b7   :  { %v1047_v33 = vpop.f32.mrf.mxu1 }
0x14b8   :  { %v1048_v34 = vadd.f32 %v2196_v18, %v1047_v33 }
0x14ba   :  { %1915 = vtanh.f32 %v1048_v34  ;;  %v1834_v5 = vmul.f32 -1.442695, %v1048_v34 }
0x14bc   :  { %1917 = vpow2.f32 %v1834_v5 }
0x14c0   :  { %v1916_v35 = vpop.eup %1915 }
0x14c1   :  { %1072 = vrot.lane.b32.xlu1 %v1916_v35, %s2099_s4 }
0x14c2   :  { %v1918_v6 = vpop.eup %1917 }
0x14c3   :  { %v1053_v7 = vadd.f32 1.0, %v1918_v6 }
0x14c5   :  { %1919 = vrcp.f32 %v1053_v7  ;;  %v1065_v11 = vand.u32 2147483648, %v1053_v7  ;;  %vm1059_vm3 = vweird.f32 %v1053_v7  ;;  %v1063_v15 = vand.u32 2147483647, %v1053_v7 }
0x14c7   :  { %v1066_v40 = vor.u32 1.1754944e-38, %v1065_v11  ;;  %vm1064_vm5 = vcmp.eq.f32.partialorder %v1063_v15, 8.507059e+37  ;;  %v1984_v11 = vld [vmem:[#allocation6 + $0x10] sm:$0xff]  ;;  %v1985_v15 = vld [vmem:[#allocation6 + $0x8] sm:$0xff] }
0x14cb   :  { %v1920_v8 = vpop.eup %1919 }
0x14cc   :  { %v1055_v9 = vmul.f32 %v1920_v8, %v1053_v7  ;;  %vm1060_vm2 = vweird.f32 %v1920_v8 }
0x14cd   :  { %vm1061_vm4 = vmor %vm1059_vm3, %vm1060_vm2 }
0x14ce   :  { %v1056_v36 = vsub.f32 1.0, %v1055_v9  ;;  %v1979_v9 = vld [vmem:[#allocation6 + $0x38] sm:$0xff] }
0x14d0   :  { %v1057_v10 = vmul.f32 %v1920_v8, %v1056_v36  ;;  %v1980_v36 = vld [vmem:[#allocation6 + $0x30] sm:$0xff] }
0x14d2   :  { %v1058_v38 = vadd.f32 %v1920_v8, %v1057_v10  ;;  %v1982_v10 = vld [vmem:[#allocation6 + $0x20] sm:$0xff] }
0x14d4   :  { %v1062_v18 = vsel %vm1061_vm4, %v1920_v8, %v1058_v38  ;;  %v1983_v38 = vld [vmem:[#allocation6 + $0x18] sm:$0xff] }
0x14d5   :  { %v1067_v44 = vsel %vm1064_vm5, %v1066_v40, %v1062_v18  ;;  %v1986_v18 = vld [vmem:[#allocation6] sm:$0xff] }
0x14d6   :  { %v1070_v49 = vmul.f32 %v1067_v44, %v2406_v19 }
0x1533   :  { %v1073_v43 = vpop.permute.xlu1 %1072 }
0x1534   :  { %v1075_v46 = vmul.f32 %v1073_v43, %v1067_v44  ;;  %v2505_v43 = vld [vmem:[%s2659_s6] ss:$0 sm:$0xff] }
0x1536   :  { %1077 = vrot.lane.b32.xlu0 %v1075_v46, %s2098_s26 }
0x15a8   :  { %v1078_v50 = vpop.permute.xlu0 %1077 }
0x15a9   :  { %v2460_v51 = vadd.f32 %v1078_v50, %v1070_v49 }
0x15ab   :  { %1921 = vtanh.f32 %v2460_v51 }
0x15b1   :  { %v1922_v23 = vpop.eup %1921 }
0x15b2   :  { %1083 = vrot.lane.b32.xlu2 %v1922_v23, %s2099_s4 }
0x160c   :  { %v1084_v53 = vpop.permute.xlu2 %1083 }
0x160d   :  { %v1086_v54 = vmul.f32 %v1084_v53, %v1067_v44 }
0x160f   :  { %v1089_v55 = vperm.slane %v1086_v54, 0  ;;  %v1088_v56 = vrot.slane %v1086_v54, 1 }
0x1611   :  { %1090 = vrot.lane.b32.xlu1 %v1089_v55, %s2098_s26  ;;  %v1114_v60 = vperm.slane %v1088_v56, 0 }
0x1613   :  { %1115 = vrot.lane.b32.xlu0 %v1114_v60, %s2098_s26 }
0x1683   :  { %v1091_v32 = vpop.permute.xlu1 %1090 }
0x1684   :  { %1836 = vmatmul.msk.f32.vlgmr.msra.gmra.mxu2 %vm107_vm0, %v1091_v32 }
0x1685   :  { %v1116_v19 = vpop.permute.xlu0 %1115  ;;  %1406 = vmatpush.msra.mxu2 %v2201_v39 }
0x1686   :  { %1838 = vmatmul.msk.f32.vlgmr.msrb.gmra.mxu3 %vm107_vm0, %v1116_v19 }
0x1687   :  { %1857 = vmatpush.xpose.msk.msrb.mxu3 %vm107_vm0, %v2229_v48 }
0x1707   :  { %v1111_v4 = vpop.f32.mrf.mxu2 }
0x1709   :  { %v1136_v1 = vpop.f32.mrf.mxu3 }
0x170a   :  { %v1142_v2 = vrot.slane %v1136_v1, 7 }
0x170c   :  { %v1143_v13 = vsel %vm309_vm7, %v1142_v2, %v1111_v4 }
0x170d   :  { %v2477_v14 = vsel %vm1139_vm6, -1e+09, %v1143_v13 }
0x170e   :  { %v1146_v39 = vsel %vm313_vm9, %v2477_v14, -inf }
0x170f   :  { %1147 = vmax.xlane.f32.xlu2 %v1146_v39 }
0x1727   :  { %1231 = vrot.lane.b32.xlu2 %v1086_v54, %s2099_s4 }
0x1782   :  { %v2482_v16 = vpop.xlane.xlu2 %1147 }
0x1783   :  { %vm1159_vm8 = vcmp.ge.f32.partialorder %v2477_v14, %v2482_v16 }
0x1784   :  { %v1160_v52 = vsel %vm1159_vm8, %v2246_v59, 8 }
0x1785   :  { %v1161_v17 = vsel %vm313_vm9, %v1160_v52, 2147483647 }
0x1786   :  { %v1163_v45 = vshra.s32 %v1161_v17, 16  ;;  %v1162_v21 = vand.u32 65535, %v1161_v17 }
0x1788   :  { %v1165_v20 = vcvt.s32.f32 %v1163_v45  ;;  %v1164_v25 = vcvt.s32.f32 %v1162_v21 }
0x178a   :  { %1166 = vmin.xlane.f32.xlu0 %v1165_v20  ;;  %v1232_v6 = vpop.permute.xlu2 %1231 }
0x17fd   :  { %v1167_v22 = vpop.xlane.xlu0 %1166 }
0x17fe   :  { %vm1168_vm10 = vcmp.eq.f32.partialorder %v1165_v20, %v1167_v22  ;;  %v1173_v27 = vcvt.f32.s32 %v1167_v22 }
0x17ff   :  { %v1169_v63 = vsel %vm1168_vm10, %v1164_v25, inf }
0x1800   :  { %1170 = vmin.xlane.f32.xlu1 %v1169_v63  ;;  %v1174_v29 = vshll.u32 %v1173_v27, 16 }
0x1873   :  { %v1171_v28 = vpop.xlane.xlu1 %1170 }
0x1874   :  { %v1172_v30 = vcvt.f32.s32 %v1171_v28 }
0x1876   :  { %v1175_v31 = vadd.s32 %v1174_v29, %v1172_v30 }
0x1878   :  { %vm1176_vm11 = vcmp.eq.s32.totalorder %v2246_v59, %v1175_v31 }
0x1879   :  { %v2490_v0 = vsel %vm1176_vm11, 1.0, %v2101_v62 }
0x187a   :  { %v1180_v33 = vrot.slane %v2490_v0, 1  ;;  %1841 = vmatmul.msk.f32.vlgmr.msra.gmra.mxu0 %vm348_vm12, %v2490_v0  ;;  %v2523_v30 = vmax.f32 %v2473_v57, %v2490_v0 }
0x187b   :  { %1428 = vmatpush.msra.mxu0 %v2208_v42  ;;  %v1981_v42 = vld [vmem:[#allocation6 + $0x28] sm:$0xff] }
0x187c   :  { %1842 = vmatmul.msk.f32.vlgmr.msrb.gmra.mxu2 %vm348_vm12, %v1180_v33  ;;  %vm1347_vm3 = vcmp.gt.f32.partialorder %v2523_v30, 0.5 }
0x187d   :  { %1855 = vmatpush.xpose.msk.msrb.mxu2 %vm107_vm0, %v2223_v47 }
0x18f7   :  { %v1200_v5 = vpop.f32.mrf.mxu0 }
0x18ff   :  { %v1222_v34 = vpop.f32.mrf.mxu2 }
0x1900   :  { %v1228_v35 = vrot.slane %v1222_v34, 7 }
0x1902   :  { %v1229_v7 = vsel %vm309_vm7, %v1228_v35, %v1200_v5 }
0x1903   :  { %v1234_v8 = vsel %vm107_vm0, %v1229_v7, %v1232_v6 }
0x1904   :  { %1843 = vmatmul.msk.f32.vlgmr.msra.gmra.mxu3 %vm186_vm1, %v1234_v8 }
0x1905   :  { %1662 = vmatpush.msra.mxu3 %v1979_v9 }
0x1907   :  { %1663 = vmatpush.msra.mxu3 %v1980_v36 }
0x1909   :  { %1664 = vmatpush.msra.mxu3 %v1981_v42 }
0x190b   :  { %1665 = vmatpush.msra.mxu3 %v1982_v10 }
0x190d   :  { %1666 = vmatpush.msra.mxu3 %v1983_v38 }
0x190f   :  { %1667 = vmatpush.msra.mxu3 %v1984_v11 }
0x1911   :  { %1668 = vmatpush.msra.mxu3 %v1985_v15 }
0x1913   :  { %1669 = vmatpush.msra.mxu3 %v1986_v18 }
0x1987   :  { %v1255_v40 = vpop.f32.mrf.mxu3 }
0x1988   :  { %v1256_v44 = vadd.f32 %v2505_v43, %v1255_v40 }
0x198a   :  { %1923 = vtanh.f32 %v1256_v44  ;;  %v1844_v49 = vmul.f32 -1.442695, %v1256_v44 }
0x198c   :  { %1925 = vpow2.f32 %v1844_v49  ;;  %v1989_v49 = vld [vmem:[#allocation2 + $0x8] sm:$0xff] }
0x1990   :  { %v1924_v46 = vpop.eup %1923 }
0x1991   :  { %1280 = vrot.lane.b32.xlu0 %v1924_v46, %s2099_s4 }
0x1992   :  { %v1926_v50 = vpop.eup %1925 }
0x1993   :  { %v1261_v23 = vadd.f32 1.0, %v1926_v50 }
0x1995   :  { %1927 = vrcp.f32 %v1261_v23  ;;  %v1273_v32 = vand.u32 2147483648, %v1261_v23  ;;  %vm1267_vm14 = vweird.f32 %v1261_v23  ;;  %v1271_v19 = vand.u32 2147483647, %v1261_v23 }
0x1997   :  { %v1274_v2 = vor.u32 1.1754944e-38, %v1273_v32  ;;  %vm1272_vm2 = vcmp.eq.f32.partialorder %v1271_v19, 8.507059e+37 }
0x199b   :  { %v1928_v53 = vpop.eup %1927 }
0x199c   :  { %v1263_v54 = vmul.f32 %v1928_v53, %v1261_v23  ;;  %vm1268_vm13 = vweird.f32 %v1928_v53 }
0x199d   :  { %vm1269_vm15 = vmor %vm1267_vm14, %vm1268_vm13 }
0x199e   :  { %v1264_v55 = vsub.f32 1.0, %v1263_v54 }
0x19a0   :  { %v1265_v56 = vmul.f32 %v1928_v53, %v1264_v55 }
0x19a2   :  { %v1266_v60 = vadd.f32 %v1928_v53, %v1265_v56 }
0x19a4   :  { %v1270_v1 = vsel %vm1269_vm15, %v1928_v53, %v1266_v60 }
0x19a5   :  { %v1275_v13 = vsel %vm1272_vm2, %v1274_v2, %v1270_v1 }
0x19a6   :  { %v1278_v52 = vmul.f32 %v1275_v13, %v2460_v51  ;;  %v1988_v51 = vld [vmem:[#allocation2] sm:$0xff] }
0x1a03   :  { %v1281_v4 = vpop.permute.xlu0 %1280 }
0x1a04   :  { %v1283_v39 = vmul.f32 %v1281_v4, %v1275_v13 }
0x1a06   :  { %1285 = vrot.lane.b32.xlu1 %v1283_v39, %s2098_s26 }
0x1a78   :  { %v1286_v17 = vpop.permute.xlu1 %1285 }
0x1a79   :  { %v2511_v45 = vadd.f32 %v1286_v17, %v1278_v52 }
0x1a7b   :  { %1929 = vtanh.f32 %v2511_v45 }
0x1a81   :  { %v1930_v20 = vpop.eup %1929 }
0x1a82   :  { %1291 = vrot.lane.b32.xlu2 %v1930_v20, %s2099_s4 }
0x1adc   :  { %v1292_v21 = vpop.permute.xlu2 %1291 }
0x1add   :  { %v1294_v22 = vmul.f32 %v1292_v21, %v1275_v13 }
0x1adf   :  { %v1297_v25 = vperm.slane %v1294_v22, 0  ;;  %v1296_v63 = vrot.slane %v1294_v22, 1 }
0x1ae1   :  { %1298 = vrot.lane.b32.xlu2 %v1297_v25, %s2098_s26  ;;  %v1322_v27 = vperm.slane %v1296_v63, 0 }
0x1ae3   :  { %1323 = vrot.lane.b32.xlu0 %v1322_v27, %s2098_s26 }
0x1b3b   :  { %v1299_v28 = vpop.permute.xlu2 %1298 }
0x1b3c   :  { %1846 = vmatmul.msk.f32.vlgmr.msrb.gmra.mxu0 %vm107_vm0, %v1299_v28 }
0x1b3d   :  { %1614 = vmatpush.msrb.mxu0 %v1988_v51 }
0x1b55   :  { %v1324_v29 = vpop.permute.xlu0 %1323 }
0x1b56   :  { %1848 = vmatmul.msk.f32.vlgmr.msra.gmra.mxu1 %vm107_vm0, %v1324_v29 }
0x1b57   :  { %1867 = vmatpush.xpose.msk.msra.mxu1 %vm107_vm0, %v2229_v48 }
0x1bb9   :  { %v1319_v34 = vpop.f32.mrf.mxu0 }
0x1bd3   :  { %v1344_v31 = vpop.f32.mrf.mxu1 }
0x1bd4   :  { %v1350_v33 = vrot.slane %v1344_v31, 7 }
0x1bd6   :  { %v1351_v35 = vsel %vm309_vm7, %v1350_v33, %v1319_v34 }
0x1bd7   :  { %v2527_v5 = vsel %vm1347_vm3, -1e+09, %v1351_v35 }
0x1bd8   :  { %v1354_v6 = vsel %vm313_vm9, %v2527_v5, -inf }
0x1bd9   :  { %1355 = vmax.xlane.f32.xlu0 %v1354_v6 }
0x1bed   :  { %1439 = vrot.lane.b32.xlu0 %v1294_v22, %s2099_s4 }
0x1c4c   :  { %v2532_v48 = vpop.xlane.xlu0 %1355 }
0x1c4d   :  { %vm1367_vm4 = vcmp.ge.f32.partialorder %v2527_v5, %v2532_v48 }
0x1c4e   :  { %v1368_v57 = vsel %vm1367_vm4, %v2246_v59, 8 }
0x1c4f   :  { %v1369_v0 = vsel %vm313_vm9, %v1368_v57, 2147483647 }
0x1c50   :  { %v1371_v7 = vshra.s32 %v1369_v0, 16  ;;  %v1370_v9 = vand.u32 65535, %v1369_v0 }
0x1c52   :  { %v1373_v8 = vcvt.s32.f32 %v1371_v7  ;;  %v1372_v42 = vcvt.s32.f32 %v1370_v9 }
0x1c54   :  { %1374 = vmin.xlane.f32.xlu1 %v1373_v8 }
0x1c5f   :  { %v1440_v54 = vpop.permute.xlu0 %1439 }
0x1cc7   :  { %v1375_v36 = vpop.xlane.xlu1 %1374 }
0x1cc8   :  { %vm1376_vm5 = vcmp.eq.f32.partialorder %v1373_v8, %v1375_v36  ;;  %v1381_v38 = vcvt.f32.s32 %v1375_v36 }
0x1cc9   :  { %v1377_v10 = vsel %vm1376_vm5, %v1372_v42, inf }
0x1cca   :  { %1378 = vmin.xlane.f32.xlu2 %v1377_v10  ;;  %v1382_v15 = vshll.u32 %v1381_v38, 16 }
0x1d3d   :  { %v1379_v11 = vpop.xlane.xlu2 %1378 }
0x1d3e   :  { %v1380_v18 = vcvt.f32.s32 %v1379_v11 }
0x1d40   :  { %v1383_v40 = vadd.s32 %v1382_v15, %v1380_v18 }
0x1d42   :  { %vm1384_vm6 = vcmp.eq.s32.totalorder %v2246_v59, %v1383_v40 }
0x1d43   :  { %v1850_v44 = vsel %vm1384_vm6, 1.0, %v2101_v62 }
0x1d44   :  { %v1388_v46 = vrot.slane %v1850_v44, 1  ;;  %1851 = vmatmul.msk.f32.vlgmr.msra.gmra.mxu2 %vm348_vm12, %v1850_v44  ;;  %v2560_v8 = vmax.f32 %v2523_v30, %v1850_v44 }
0x1d45   :  { %1636 = vmatpush.msra.mxu2 %v1989_v49 }
0x1d46   :  { %1852 = vmatmul.msk.f32.vlgmr.msra.gmra.mxu0 %vm348_vm12, %v1388_v46  ;;  %vm1555_vm14 = vcmp.gt.f32.partialorder %v2560_v8, 0.5 }
0x1d47   :  { %1865 = vmatpush.xpose.msk.msra.mxu0 %vm107_vm0, %v2223_v47 }
0x1dc3   :  { %v1430_v50 = vpop.f32.mrf.mxu0 }
0x1dc4   :  { %v1436_v23 = vrot.slane %v1430_v50, 7 }
0x1dc7   :  { %v1408_v53 = vpop.f32.mrf.mxu2 }
0x1dc8   :  { %v1437_v55 = vsel %vm309_vm7, %v1436_v23, %v1408_v53 }
0x1dc9   :  { %v1442_v56 = vsel %vm107_vm0, %v1437_v55, %v1440_v54 }
0x1dca   :  { %1853 = vmatmul.msk.f32.vlgmr.msrb.gmra.mxu1 %vm186_vm1, %v1442_v56 }
0x1e47   :  { %v1463_v60 = vpop.f32.mrf.mxu1 }
0x1e48   :  { %v1464_v32 = vadd.f32 %v2505_v43, %v1463_v60 }
0x1e4a   :  { %1931 = vtanh.f32 %v1464_v32  ;;  %v1854_v1 = vmul.f32 -1.442695, %v1464_v32 }
0x1e4c   :  { %1933 = vpow2.f32 %v1854_v1 }
0x1e50   :  { %v1932_v19 = vpop.eup %1931 }
0x1e51   :  { %1488 = vrot.lane.b32.xlu1 %v1932_v19, %s2099_s4 }
0x1e52   :  { %v1934_v47 = vpop.eup %1933 }
0x1e53   :  { %v1469_v2 = vadd.f32 1.0, %v1934_v47 }
0x1e55   :  { %1935 = vrcp.f32 %v1469_v2  ;;  %v1481_v20 = vand.u32 2147483648, %v1469_v2  ;;  %vm1475_vm10 = vweird.f32 %v1469_v2  ;;  %v1479_v21 = vand.u32 2147483647, %v1469_v2 }
0x1e57   :  { %v1482_v25 = vor.u32 1.1754944e-38, %v1481_v20  ;;  %vm1480_vm13 = vcmp.eq.f32.partialorder %v1479_v21, 8.507059e+37 }
0x1e5b   :  { %v1936_v4 = vpop.eup %1935 }
0x1e5c   :  { %v1471_v13 = vmul.f32 %v1936_v4, %v1469_v2  ;;  %vm1476_vm8 = vweird.f32 %v1936_v4 }
0x1e5d   :  { %vm1477_vm11 = vmor %vm1475_vm10, %vm1476_vm8 }
0x1e5e   :  { %v1472_v39 = vsub.f32 1.0, %v1471_v13 }
0x1e60   :  { %v1473_v52 = vmul.f32 %v1936_v4, %v1472_v39 }
0x1e62   :  { %v1474_v17 = vadd.f32 %v1936_v4, %v1473_v52 }
0x1e64   :  { %v1478_v22 = vsel %vm1477_vm11, %v1936_v4, %v1474_v17 }
0x1e65   :  { %v1483_v27 = vsel %vm1480_vm13, %v1482_v25, %v1478_v22 }
0x1e66   :  { %v1486_v51 = vmul.f32 %v1483_v27, %v2511_v45 }
0x1ec3   :  { %v1489_v63 = vpop.permute.xlu1 %1488 }
0x1ec4   :  { %v1491_v28 = vmul.f32 %v1489_v63, %v1483_v27 }
0x1ec6   :  { %1493 = vrot.lane.b32.xlu2 %v1491_v28, %s2098_s26 }
0x1f20   :  { %v1494_v29 = vpop.permute.xlu2 %1493 }
0x1f21   :  { %v2551_v31 = vadd.f32 %v1494_v29, %v1486_v51 }
0x1f23   :  { %1937 = vtanh.f32 %v2551_v31 }
0x1f29   :  { %v1938_v33 = vpop.eup %1937 }
0x1f2a   :  { %1499 = vrot.lane.b32.xlu0 %v1938_v33, %s2099_s4 }
0x1f9c   :  { %v1500_v34 = vpop.permute.xlu0 %1499 }
0x1f9d   :  { %v1502_v35 = vmul.f32 %v1500_v34, %v1483_v27 }
0x1f9f   :  { %v1505_v6 = vperm.slane %v1502_v35, 0  ;;  %v1504_v57 = vrot.slane %v1502_v35, 1 }
0x1fa1   :  { %1506 = vrot.lane.b32.xlu0 %v1505_v6, %s2098_s26  ;;  %v1530_v0 = vperm.slane %v1504_v57, 0 }
0x1fa3   :  { %1531 = vrot.lane.b32.xlu1 %v1530_v0, %s2098_s26 }
0x2013   :  { %v1507_v7 = vpop.permute.xlu0 %1506 }
0x2014   :  { %1856 = vmatmul.msk.f32.vlgmr.msrb.gmra.mxu2 %vm107_vm0, %v1507_v7 }
0x2015   :  { %v1532_v45 = vpop.permute.xlu1 %1531 }
0x2016   :  { %1858 = vmatmul.msk.f32.vlgmr.msrb.gmra.mxu3 %vm107_vm0, %v1532_v45 }
0x2097   :  { %v1527_v42 = vpop.f32.mrf.mxu2 }
0x2099   :  { %v1552_v9 = vpop.f32.mrf.mxu3 }
0x209a   :  { %v1558_v36 = vrot.slane %v1552_v9, 7 }
0x209c   :  { %v1559_v10 = vsel %vm309_vm7, %v1558_v36, %v1527_v42 }
0x209d   :  { %v2564_v38 = vsel %vm1555_vm14, -1e+09, %v1559_v10 }
0x209e   :  { %v1562_v11 = vsel %vm313_vm9, %v2564_v38, -inf }
0x209f   :  { %1563 = vmax.xlane.f32.xlu2 %v1562_v11 }
0x20b7   :  { %1647 = vrot.lane.b32.xlu2 %v1502_v35, %s2099_s4 }
0x2112   :  { %v2569_v15 = vpop.xlane.xlu2 %1563 }
0x2113   :  { %vm1575_vm15 = vcmp.ge.f32.partialorder %v2564_v38, %v2569_v15 }
0x2114   :  { %v1576_v30 = vsel %vm1575_vm15, %v2246_v59, 8 }
0x2115   :  { %v1577_v18 = vsel %vm313_vm9, %v1576_v30, 2147483647  ;;  %v525_v30 = vsub.f32 %v2308_v24, %v2313_v26 }
0x2116   :  { %v1579_v40 = vshra.s32 %v1577_v18, 16  ;;  %v1578_v46 = vand.u32 65535, %v1577_v18 }
0x2117   :  { %v526_v18 = vmul.f32 1.442695, %v525_v30 }
0x2118   :  { %v1581_v44 = vcvt.s32.f32 %v1579_v40  ;;  %v1580_v50 = vcvt.s32.f32 %v1578_v46  ;;  %v941_v46 = vsub.f32 %v2423_v58, %v2428_v61 }
0x211a   :  { %1582 = vmin.xlane.f32.xlu1 %v1581_v44  ;;  %v1648_v4 = vpop.permute.xlu2 %1647 }
0x218d   :  { %v1583_v49 = vpop.xlane.xlu1 %1582 }
0x218e   :  { %vm1584_vm2 = vcmp.eq.f32.partialorder %v1581_v44, %v1583_v49  ;;  %v1589_v53 = vcvt.f32.s32 %v1583_v49  ;;  %v1149_v44 = vsub.f32 %v2477_v14, %v2482_v16 }
0x218f   :  { %v1585_v23 = vsel %vm1584_vm2, %v1580_v50, inf }
0x2190   :  { %1586 = vmin.xlane.f32.xlu0 %v1585_v23  ;;  %v1590_v55 = vshll.u32 %v1589_v53, 16  ;;  %v1150_v49 = vmul.f32 1.442695, %v1149_v44  ;;  %v942_v23 = vmul.f32 1.442695, %v941_v46 }
0x2203   :  { %v1587_v54 = vpop.xlane.xlu0 %1586 }
0x2204   :  { %v1588_v56 = vcvt.f32.s32 %v1587_v54 }
0x2206   :  { %v1591_v60 = vadd.s32 %v1590_v55, %v1588_v56 }
0x2208   :  { %vm1592_vm3 = vcmp.eq.s32.totalorder %v2246_v59, %v1591_v60 }
0x2209   :  { %v2577_v32 = vsel %vm1592_vm3, 1.0, %v2101_v62 }
0x220a   :  { %v1596_v19 = vrot.slane %v2577_v32, 1  ;;  %1861 = vmatmul.msk.f32.vlgmr.msrb.gmra.mxu0 %vm348_vm12, %v2577_v32 }
0x220c   :  { %1862 = vmatmul.msk.f32.vlgmr.msra.gmra.mxu2 %vm348_vm12, %v1596_v19 }
0x2287   :  { %v1616_v2 = vpop.f32.mrf.mxu0 }
0x228f   :  { %v1638_v1 = vpop.f32.mrf.mxu2 }
0x2290   :  { %v1644_v47 = vrot.slane %v1638_v1, 7 }
0x2292   :  { %v1645_v13 = vsel %vm309_vm7, %v1644_v47, %v1616_v2 }
0x2293   :  { %v1650_v39 = vsel %vm107_vm0, %v1645_v13, %v1648_v4 }
0x2294   :  { %1863 = vmatmul.msk.f32.vlgmr.msra.gmra.mxu3 %vm186_vm1, %v1650_v39 }
0x2317   :  { %v1671_v59 = vpop.f32.mrf.mxu3 }
0x2318   :  { %v1672_v62 = vadd.f32 %v2505_v43, %v1671_v59 }
0x231a   :  { %1939 = vtanh.f32 %v1672_v62  ;;  %v1864_v17 = vmul.f32 -1.442695, %v1672_v62 }
0x231c   :  { %1941 = vpow2.f32 %v1864_v17 }
0x2320   :  { %v1940_v52 = vpop.eup %1939 }
0x2321   :  { %1696 = vrot.lane.b32.xlu1 %v1940_v52, %s2099_s4 }
0x2322   :  { %v1942_v20 = vpop.eup %1941 }
0x2323   :  { %v1677_v21 = vadd.f32 1.0, %v1942_v20 }
0x2325   :  { %1943 = vrcp.f32 %v1677_v21  ;;  %v1689_v51 = vand.u32 2147483648, %v1677_v21  ;;  %vm1683_vm1 = vweird.f32 %v1677_v21  ;;  %v1687_v29 = vand.u32 2147483647, %v1677_v21 }
0x2327   :  { %v1690_v33 = vor.u32 1.1754944e-38, %v1689_v51  ;;  %vm1688_vm5 = vcmp.eq.f32.partialorder %v1687_v29, 8.507059e+37 }
0x232b   :  { %v1944_v22 = vpop.eup %1943 }
0x232c   :  { %v1679_v25 = vmul.f32 %v1944_v22, %v1677_v21  ;;  %vm1684_vm12 = vweird.f32 %v1944_v22 }
0x232d   :  { %vm1685_vm4 = vmor %vm1683_vm1, %vm1684_vm12 }
0x232e   :  { %v1680_v63 = vsub.f32 1.0, %v1679_v25  ;;  %v1641_v25 = vmax.f32 %v2560_v8, %v2577_v32 }
0x2330   :  { %v1681_v27 = vmul.f32 %v1944_v22, %v1680_v63 }
0x2332   :  { %v1682_v28 = vadd.f32 %v1944_v22, %v1681_v27 }
0x2334   :  { %v1686_v43 = vsel %vm1685_vm4, %v1944_v22, %v1682_v28  ;;  %v733_v22 = vsub.f32 %v2369_v37, %v2374_v41 }
0x2335   :  { %v1691_v35 = vsel %vm1688_vm5, %v1690_v33, %v1686_v43  ;;  %v1357_v43 = vsub.f32 %v2527_v5, %v2532_v48 }
0x2336   :  { %v1694_v57 = vmul.f32 %v1691_v35, %v2551_v31  ;;  %v317_v31 = vsub.f32 %v2254_v3, %v2258_v12  ;;  %v1565_v3 = vsub.f32 %v2564_v38, %v2569_v15  ;;  %v734_v63 = vmul.f32 1.442695, %v733_v22 }
0x2338   :  { %v318_v40 = vmul.f32 1.442695, %v317_v31  ;;  %v1566_v14 = vmul.f32 1.442695, %v1565_v3 }
0x2393   :  { %v1697_v34 = vpop.permute.xlu1 %1696 }
0x2394   :  { %v1699_v6 = vmul.f32 %v1697_v34, %v1691_v35 }
0x2396   :  { %1701 = vrot.lane.b32.xlu0 %v1699_v6, %s2098_s26 }
0x2408   :  { %v1702_v0 = vpop.permute.xlu0 %1701 }
0x2409   :  { %v1704_v7 = vadd.f32 %v1702_v0, %v1694_v57 }
0x240b   :  { %1945 = vtanh.f32 %v1704_v7 }
0x240c   :  { %1947 = vpow2.f32 %v526_v18 }
0x240d   :  { %1949 = vpow2.f32 %v318_v40 }
0x240e   :  { %1951 = vpow2.f32 %v1150_v49 }
0x240f   :  { %1953 = vpow2.f32 %v942_v23 }
0x2410   :  { %1955 = vpow2.f32 %v1566_v14 }
0x2411   :  { %v1946_v45 = vpop.eup %1945 }
0x2412   :  { %1707 = vrot.lane.b32.xlu2 %v1946_v45, %s2099_s4  ;;  %v1948_v50 = vpop.eup %1947 }
0x2413   :  { %v1950_v53 = vpop.eup %1949  ;;  %v528_v24 = vsel %vm313_vm9, %v1948_v50, 0.0 }
0x2414   :  { %v320_v12 = vsel %vm313_vm9, %v1950_v53, 0.0  ;;  %v1952_v26 = vpop.eup %1951 }
0x2415   :  { %v1954_v16 = vpop.eup %1953  ;;  %v1152_v58 = vsel %vm313_vm9, %v1952_v26, 0.0 }
0x2416   :  { %v944_v61 = vsel %vm313_vm9, %v1954_v16, 0.0  ;;  %v1956_v54 = vpop.eup %1955 }
0x2417   :  { %v1568_v55 = vsel %vm313_vm9, %v1956_v54, 0.0 }
0x246c   :  { %v1708_v9 = vpop.permute.xlu2 %1707 }
0x246d   :  { %v1710_v36 = vmul.f32 %v1708_v9, %v1691_v35  ;;  %v1358_v35 = vmul.f32 1.442695, %v1357_v43 }
0x246f   :  { %v1712_v42 = vrot.slane %v1710_v36, 1  ;;  %v1713_v10 = vperm.slane %v1710_v36, 0 }
0x2471   :  { %v1738_v11 = vperm.slane %v1712_v42, 0  ;;  %1714 = vrot.lane.b32.xlu1 %v1713_v10, %s2098_s26 }
0x2473   :  { %1739 = vrot.lane.b32.xlu0 %v1738_v11, %s2098_s26 }
0x249b   :  { %529 = vadd.xlane.f32.xlu1 %v528_v24 }
0x249d   :  { %321 = vadd.xlane.f32.xlu0 %v320_v12 }
0x24a3   :  { %1153 = vadd.xlane.f32.xlu1 %v1152_v58 }
0x24a5   :  { %945 = vadd.xlane.f32.xlu0 %v944_v61 }
0x24ad   :  { %1569 = vadd.xlane.f32.xlu0 %v1568_v55 }
0x24e3   :  { %v1715_v56 = vpop.permute.xlu1 %1714 }
0x24e4   :  { %1866 = vmatmul.msk.f32.vlgmr.msra.gmra.mxu0 %vm107_vm0, %v1715_v56 }
0x24e5   :  { %v1740_v38 = vpop.permute.xlu0 %1739 }
0x24e6   :  { %1868 = vmatmul.msk.f32.vlgmr.msra.gmra.mxu1 %vm107_vm0, %v1740_v38  ;;  %vm1763_vm0 = vcmp.gt.f32.partialorder %v1641_v25, 0.5 }
0x250e   :  { %v530_v15 = vpop.xlane.xlu1 %529 }
0x250f   :  { %1957 = vrcp.f32 %v530_v15 }
0x2510   :  { %v322_v60 = vpop.xlane.xlu0 %321 }
0x2511   :  { %1959 = vrcp.f32 %v322_v60 }
0x2515   :  { %v1958_v19 = vpop.eup %1957 }
0x2516   :  { %v532_v1 = vmul.f32 %v1958_v19, %v1948_v50  ;;  %v1154_v47 = vpop.xlane.xlu1 %1153 }
0x2517   :  { %v1960_v2 = vpop.eup %1959  ;;  %1961 = vrcp.f32 %v1154_v47 }
0x2518   :  { %1809 = vst.msk [vmem:[%s2661_s8 + $0x2] sm:$0x3] %vm313_vm9, %v532_v1  ;;  %v324_v4 = vmul.f32 %v1960_v2, %v1950_v53  ;;  %v946_v13 = vpop.xlane.xlu0 %945 }
0x2519   :  { %1963 = vrcp.f32 %v946_v13 }
0x251a   :  { %325 = vst.msk [vmem:[%s2661_s8] sm:$0x3] %vm313_vm9, %v324_v4 }
0x251d   :  { %v1962_v39 = vpop.eup %1961 }
0x251e   :  { %v1156_v59 = vmul.f32 %v1962_v39, %v1952_v26 }
0x251f   :  { %v1964_v62 = vpop.eup %1963 }
0x2520   :  { %1839 = vst.msk [vmem:[%s2661_s8 + $0x8] sm:$0x3] %vm313_vm9, %v1156_v59  ;;  %v948_v52 = vmul.f32 %v1964_v62, %v1954_v16  ;;  %v1570_v17 = vpop.xlane.xlu0 %1569 }
0x2521   :  { %1965 = vrcp.f32 %v1570_v17 }
0x2522   :  { %1829 = vst.msk [vmem:[%s2661_s8 + $0x6] sm:$0x3] %vm313_vm9, %v948_v52  ;;  %1967 = vpow2.f32 %v734_v63 }
0x2523   :  { %1969 = vpow2.f32 %v1358_v35 }
0x2527   :  { %v1966_v20 = vpop.eup %1965 }
0x2528   :  { %v1572_v21 = vmul.f32 %v1966_v20, %v1956_v54  ;;  %v1968_v37 = vpop.eup %1967 }
0x2529   :  { %v736_v41 = vsel %vm313_vm9, %v1968_v37, 0.0  ;;  %v1970_v8 = vpop.eup %1969 }
0x252a   :  { %1859 = vst.msk [vmem:[%s2661_s8 + $0xc] sm:$0x3] %vm313_vm9, %v1572_v21  ;;  %v1360_v32 = vsel %vm313_vm9, %v1970_v8, 0.0 }
0x2561   :  { %v1735_v51 = vpop.f32.mrf.mxu0 }
0x2563   :  { %v1760_v27 = vpop.f32.mrf.mxu1 }
0x2564   :  { %v1766_v28 = vrot.slane %v1760_v27, 7 }
0x2566   :  { %v1767_v29 = vsel %vm309_vm7, %v1766_v28, %v1735_v51 }
0x2567   :  { %v1769_v33 = vsel %vm1763_vm0, -1e+09, %v1767_v29 }
0x2568   :  { %v1770_v34 = vsel %vm313_vm9, %v1769_v33, -inf }
0x2569   :  { %1771 = vmax.xlane.f32.xlu2 %v1770_v34 }
0x2571   :  { %737 = vadd.xlane.f32.xlu2 %v736_v41 }
0x2579   :  { %1361 = vadd.xlane.f32.xlu2 %v1360_v32 }
0x25dc   :  { %v1772_v6 = vpop.xlane.xlu2 %1771 }
0x25dd   :  { %v1773_v57 = vsub.f32 %v1769_v33, %v1772_v6 }
0x25df   :  { %v1774_v0 = vmul.f32 1.442695, %v1773_v57 }
0x25e1   :  { %1971 = vpow2.f32 %v1774_v0 }
0x25e4   :  { %v738_v7 = vpop.xlane.xlu2 %737 }
0x25e5   :  { %1973 = vrcp.f32 %v738_v7 }
0x25e7   :  { %v1972_v5 = vpop.eup %1971 }
0x25e8   :  { %v1776_v48 = vsel %vm313_vm9, %v1972_v5, 0.0 }
0x25e9   :  { %1777 = vadd.xlane.f32.xlu1 %v1776_v48 }
0x25eb   :  { %v1974_v45 = vpop.eup %1973 }
0x25ec   :  { %v740_v9 = vmul.f32 %v1974_v45, %v1968_v37  ;;  %v1362_v36 = vpop.xlane.xlu2 %1361 }
0x25ed   :  { %1975 = vrcp.f32 %v1362_v36 }
0x25ee   :  { %1819 = vst.msk [vmem:[%s2661_s8 + $0x4] sm:$0x3] %vm313_vm9, %v740_v9 }
0x25f3   :  { %v1976_v42 = vpop.eup %1975 }
0x25f4   :  { %v1364_v10 = vmul.f32 %v1976_v42, %v1970_v8 }
0x25f6   :  { %1849 = vst.msk [vmem:[%s2661_s8 + $0xa] sm:$0x3] %vm313_vm9, %v1364_v10 }
0x265c   :  { %v1778_v11 = vpop.xlane.xlu1 %1777 }
0x265d   :  { %1977 = vrcp.f32 %v1778_v11 }
0x2663   :  { %v1978_v30 = vpop.eup %1977 }
0x2664   :  { %v1780_v31 = vmul.f32 %v1978_v30, %v1972_v5 }
0x2666   :  { %1869 = vst.msk [vmem:[%s2661_s8 + $0xe] sm:$0x3] %vm313_vm9, %v1780_v31 }
0x2667   :  { %1787 = vsyncpa [#allocation3], 1 }
0x2668   :  { %1788 = vsyncpa [#allocation5], 1 }
0x2669   :  { %1789 = vsyncpa [#allocation8], 1 }

</bundles_post_ra>
